<compile_context>
chip_gen: v7x
topology: tpu7x:2x2x1
jax: 0.10.0
libtpu: 0.0.40
codegen_flags: <defaults>
</compile_context>

<pallas_src>
import functools

import jax
import jax.numpy as jnp
from jax import lax
from jax.experimental import pallas as pl
from jax.experimental.pallas import tpu as pltpu


def _round_up(x, m):
    return ((x + m - 1) // m) * m


def _vmem_limit_bytes():
    """Generation-aware VMEM budget: ~3/4 of physical, 48 MiB safe fallback."""
    try:
        cap = int(pltpu.get_tpu_info().vmem_capacity_bytes)
        return min(cap - cap // 4, 96 * 1024 * 1024)
    except Exception:
        return 48 * 1024 * 1024


def _pick_pixel_tile(p, max_tile=65536):
    """Largest multiple-of-128 divisor of p (<= max_tile); else the full p."""
    if p <= max_tile:
        return p
    for cand in range(max_tile, 127, -128):
        if p % cand == 0:
            return cand
    return p


# ----------------------------------------------------------------------------
# Pallas kernel 1: layer0 = 7x7/s2 conv (+folded BN) + ReLU, in-VMEM im2col
# ----------------------------------------------------------------------------
def _layer0_kernel(x_ref, w_ref, b_ref, o_ref, patch_ref,
                   *, C, K, Kp, Ho, Wo, W2):
    # x_ref : (1, 4*C, H2*W2) bf16  -- whole space-to-depth image (resident)
    # w_ref : (Cout, Kp)      bf16  -- folded conv+BN weights (resident)
    # b_ref : (Cout, 1)       f32   -- folded BN bias (resident)
    # o_ref : (1, Cout, Ho*Wo) bf16 -- NCHW-flat output block (lane-dense)
    # patch_ref : (Kp, Ho*W2) bf16  -- VMEM im2col slab (never touches HBM)
    slab_w = Ho * W2

    # Zero the K-padding rows so (zero weight) x (uninitialized VMEM) can never
    # inject NaN/Inf into the accumulation.
    if Kp > K:
        patch_ref[K:Kp, :] = jnp.zeros((Kp - K, slab_w), jnp.bfloat16)

    # In-VMEM im2col: 49 contiguous, static 2-D slice copies.  Flat (H2*W2)
    # layout of the phase image makes every tap a single lane-contiguous run;
    # the (W2 - Wo) trailing columns per output row are junk and are skipped
    # at store time below.
    for kh in range(7):
        for kw in range(7):
            ph = (kh % 2) * 2 + (kw % 2)
            base = (kh // 2) * W2 + (kw // 2)
            r0 = (kh * 7 + kw) * C
            patch_ref[r0:r0 + C, :] = x_ref[0, ph * C:(ph + 1) * C,
                                            base:base + slab_w]

    # MXU matmul over output-row groups; pixels stay on the lane / MXU-N axis.
    rows_per_group = max(1, min(Ho, 2048 // W2))
    for g0 in range(0, Ho, rows_per_group):
        g = min(rows_per_group, Ho - g0)
        res = jnp.dot(w_ref[...], patch_ref[:, g0 * W2:(g0 + g) * W2],
                      preferred_element_type=jnp.float32)
        res = jnp.maximum(res + b_ref[...], 0.0).astype(o_ref.dtype)
        for q in range(g):
            ho = g0 + q
            o_ref[0, :, ho * Wo:(ho + 1) * Wo] = res[:, q * W2:q * W2 + Wo]


@jax.jit
def encoder_layer0(x, conv1_w, bn_gamma, bn_beta, bn_mean, bn_var, eps=1e-5):
    """ResNet101 'layer0': conv1(7x7,s2,p3,bias=False) -> bn1(eval) -> relu.

    x: (N, 3, H, W) NCHW, conv1_w: (64, 3, 7, 7).
    Returns (N, 64, ceil(H/2), ceil(W/2)) bfloat16 in NCHW layout.
    """
    N, C, H, W = x.shape
    Cout = conv1_w.shape[0]
    Ho = (H - 1) // 2 + 1
    Wo = (W - 1) // 2 + 1
    K = C * 7 * 7
    Kp = _round_up(K, 16)

    # Fold eval-mode BN into the conv; weight rows ordered (kh, kw, c) to match
    # the in-kernel slab row order; cast to bf16 (f32 accumulate on the MXU).
    scale = bn_gamma / jnp.sqrt(bn_var + eps)
    w_fold = (conv1_w * scale[:, None, None, None]).transpose(0, 2, 3, 1)
    w_fold = w_fold.reshape(Cout, K)
    w_p = jnp.pad(w_fold, ((0, 0), (0, Kp - K))).astype(jnp.bfloat16)
    b_col = (bn_beta - bn_mean * scale).reshape(Cout, 1).astype(jnp.float32)

    # Cheap pre-pass: zero-pad, cast bf16 and split into the 4 stride-2 phases
    # (space-to-depth).  This is ~= input-sized; the K=160-row patch slab never
    # round-trips HBM.
    Hp = H + 8 + (H % 2)          # even, >= H+6, guarantees H2 >= Ho+4
    Wp = W + 6 + (W % 2)          # even, >= W+6
    H2, W2 = Hp // 2, Wp // 2
    xs = jnp.pad(x.astype(jnp.bfloat16),
                 ((0, 0), (0, 0), (3, Hp - H - 3), (3, Wp - W - 3)))
    xs = xs.reshape(N, C, H2, 2, W2, 2).transpose(0, 3, 5, 1, 2, 4)
    xs = xs.reshape(N, 4 * C, H2 * W2)

    kernel = functools.partial(_layer0_kernel, C=C, K=K, Kp=Kp,
                               Ho=Ho, Wo=Wo, W2=W2)
    out = pl.pallas_call(
        kernel,
        out_shape=jax.ShapeDtypeStruct((N, Cout, Ho * Wo), jnp.bfloat16),
        grid_spec=pltpu.PrefetchScalarGridSpec(
            num_scalar_prefetch=0,
            grid=(N,),
            in_specs=[
                pl.BlockSpec((1, 4 * C, H2 * W2), lambda n: (n, 0, 0)),
                pl.BlockSpec((Cout, Kp), lambda n: (0, 0)),       # resident
                pl.BlockSpec((Cout, 1), lambda n: (0, 0)),        # resident
            ],
            out_specs=pl.BlockSpec((1, Cout, Ho * Wo), lambda n: (n, 0, 0)),
            scratch_shapes=[pltpu.VMEM((Kp, Ho * W2), jnp.bfloat16)],
        ),
        compiler_params=pltpu.CompilerParams(
            dimension_semantics=("parallel",),
            vmem_limit_bytes=_vmem_limit_bytes()),
    )(xs, w_p, b_col)

    # Free view: the kernel already wrote NCHW-ordered pixels.
    return out.reshape(N, Cout, Ho, Wo)


# ----------------------------------------------------------------------------
# Pallas kernel 2: 1x1 final conv on the VPU (pixels on lanes), sigmoid on EUP
# ----------------------------------------------------------------------------
def _final_conv_kernel(x_ref, w_ref, b_ref, o_ref, *, apply_sigmoid):
    # x_ref: (1, C, tile_p) f32 | w_ref: (C, 1) f32 | b_ref: (1,) f32 in SMEM
    x = x_ref[0]
    y = jnp.sum(x * w_ref[...], axis=0, keepdims=True) + b_ref[0]
    if apply_sigmoid:
        y = jax.nn.sigmoid(y)
    o_ref[0] = y.astype(o_ref.dtype)


@functools.partial(jax.jit, static_argnames=("sigmoid",))
def cru_final_conv(x_dec, w, b, sigmoid=False):
    """final_conv: 1x1 Conv2d(dec_out_chnls -> 1), optional sigmoid (inference).

    x_dec: (N, Cdec, H, W) NCHW (the torch.cat of decoder outputs),
    w: (1, Cdec, 1, 1), b: (1,).  Returns (N, 1, H, W) f32.
    """
    N, C, H, W = x_dec.shape
    P = H * W
    tile_p = _pick_pixel_tile(P)          # big lane-dense blocks, no padding

    x3 = x_dec.reshape(N, C, P)           # free view, no transpose pre-pass
    w_col = w.reshape(C, 1).astype(jnp.float32)
    b1 = b.reshape(1).astype(jnp.float32)

    out = pl.pallas_call(
        functools.partial(_final_conv_kernel, apply_sigmoid=sigmoid),
        out_shape=jax.ShapeDtypeStruct((N, 1, P), jnp.float32),
        grid_spec=pltpu.PrefetchScalarGridSpec(
            num_scalar_prefetch=0,
            grid=(N, P // tile_p),
            in_specs=[
                pl.BlockSpec((1, C, tile_p), lambda n, t: (n, 0, t)),
                pl.BlockSpec((C, 1), lambda n, t: (0, 0)),          # resident
                pl.BlockSpec(memory_space=pltpu.MemorySpace.SMEM),   # bias
            ],
            out_specs=pl.BlockSpec((1, 1, tile_p), lambda n, t: (n, 0, t)),
        ),
        compiler_params=pltpu.CompilerParams(
            dimension_semantics=("parallel", "parallel"),
            vmem_limit_bytes=_vmem_limit_bytes()),
    )(x3, w_col, b1)

    return out.reshape(N, 1, H, W)


# ----------------------------------------------------------------------------
# Main
# ----------------------------------------------------------------------------
if __name__ == "__main__":
    key = jax.random.PRNGKey(0)
    k = jax.random.split(key, 8)

    # ---- deterministic parameter init (shapes from the module's __init__) ----
    conv1_w = jax.random.normal(k[0], (64, 3, 7, 7), jnp.float32) * 0.05
    bn_gamma = 1.0 + 0.1 * jax.random.normal(k[1], (64,), jnp.float32)
    bn_beta = 0.1 * jax.random.normal(k[2], (64,), jnp.float32)
    bn_mean = 0.05 * jax.random.normal(k[3], (64,), jnp.float32)
    bn_var = jnp.abs(jax.random.normal(k[4], (64,), jnp.float32)) + 0.5

    dec_out_chnls = 8                      # sum of cfg.decoders[*].up_chnls[-1]
    final_w = jax.random.normal(k[5], (1, dec_out_chnls, 1, 1), jnp.float32) * 0.1
    final_b = jax.random.normal(k[6], (1,), jnp.float32) * 0.1

    # ---- inputs ----
    x = jax.random.normal(k[7], (2, 3, 16, 16), jnp.float32)          # image, NCHW
    # stand-in for torch.cat(decoder outputs, dim=1) at original spatial size
    x_dec = jax.random.normal(jax.random.PRNGKey(1),
                              (2, dec_out_chnls, 16, 16), jnp.float32)

    # ---- run Pallas kernels ----
    feat0 = jax.block_until_ready(
        encoder_layer0(x, conv1_w, bn_gamma, bn_beta, bn_mean, bn_var))
    logits = jax.block_until_ready(cru_final_conv(x_dec, final_w, final_b))
    probs = jax.block_until_ready(
        cru_final_conv(x_dec, final_w, final_b, sigmoid=True))

    # ---- reference checks (plain JAX, same bf16-quantized operands) ----
    scale = bn_gamma / jnp.sqrt(bn_var + 1e-5)
    w_fold = conv1_w * scale[:, None, None, None]
    b_fold = bn_beta - bn_mean * scale
    xq = x.astype(jnp.bfloat16).astype(jnp.float32)
    wq = w_fold.astype(jnp.bfloat16).astype(jnp.float32)
    ref0 = lax.conv_general_dilated(
        xq, wq, window_strides=(2, 2), padding=((3, 3), (3, 3)),
        dimension_numbers=("NCHW", "OIHW", "NCHW"))
    ref0 = jnp.maximum(ref0 + b_fold[None, :, None, None], 0.0)

    ref_logits = jnp.einsum("nchw,oc->nohw", x_dec,
                            final_w.reshape(1, dec_out_chnls)) \
                 + final_b[None, :, None, None]
    ref_probs = jax.nn.sigmoid(ref_logits)

    assert feat0.shape == (2, 64, 8, 8)
    assert logits.shape == (2, 1, 16, 16)
    assert jnp.allclose(feat0.astype(jnp.float32), ref0, rtol=2e-2, atol=2e-2)
    assert jnp.allclose(logits, ref_logits, rtol=1e-3, atol=1e-4)
    assert jnp.allclose(probs, ref_probs, rtol=1e-3, atol=1e-4)

    print("KERNEL_OK")
</pallas_src>

<mosaic_0001>
module attributes {stable_mosaic.version = 11 : i64} {
  func.func @_layer0_kernel(%arg0: i32, %arg1: memref<1x12x132xbf16, #tpu.memory_space<vmem>>, %arg2: memref<64x160xbf16, #tpu.memory_space<vmem>>, %arg3: memref<64x1xf32, #tpu.memory_space<vmem>>, %arg4: memref<1x64x64xbf16, #tpu.memory_space<vmem>>, %arg5: memref<160x88xbf16, #tpu.memory_space<vmem>>) attributes {dimension_semantics = [#tpu.dimension_semantics<parallel>], iteration_bounds = array<i64: 2>, scalar_prefetch = 0 : i64, scratch_operands = 1 : i64, tpu.core_type = #tpu.core_type<tc>, window_params = [{transform_indices = @transform_0, window_bounds = array<i64: 1, 12, 132>}, {pipeline_mode = #tpu.pipeline_mode<synchronous>, transform_indices = @transform_1, window_bounds = array<i64: 64, 160>}, {pipeline_mode = #tpu.pipeline_mode<synchronous>, transform_indices = @transform_2, window_bounds = array<i64: 64, 1>}, {transform_indices = @transform_3, window_bounds = array<i64: 1, 64, 64>}]} {
    %cst = arith.constant 0.000000e+00 : bf16
    %0 = vector.broadcast %cst : bf16 to vector<13x88xbf16>
    %c147 = arith.constant 147 : index
    %c0 = arith.constant 0 : index
    %1 = vector.load %arg5[%c147, %c0] : memref<160x88xbf16, #tpu.memory_space<vmem>>, vector<13x88xbf16>
    tpu.vector_store %arg5[%c147, %c0], %0 {strides = array<i32>} : memref<160x88xbf16, #tpu.memory_space<vmem>>, vector<13x88xbf16>,
    %c0_0 = arith.constant 0 : index
    %c0_1 = arith.constant 0 : index
    %c0_2 = arith.constant 0 : index
    %2 = vector.load %arg1[%c0_0, %c0_1, %c0_2] : memref<1x12x132xbf16, #tpu.memory_space<vmem>>, vector<1x3x88xbf16>
    %3 = vector.shape_cast %2 : vector<1x3x88xbf16> to vector<3x88xbf16>
    %c0_3 = arith.constant 0 : index
    %c0_4 = arith.constant 0 : index
    %4 = vector.load %arg5[%c0_3, %c0_4] : memref<160x88xbf16, #tpu.memory_space<vmem>>, vector<3x88xbf16>
    tpu.vector_store %arg5[%c0_3, %c0_4], %3 {strides = array<i32>} : memref<160x88xbf16, #tpu.memory_space<vmem>>, vector<3x88xbf16>,
    %c0_5 = arith.constant 0 : index
    %c3 = arith.constant 3 : index
    %c0_6 = arith.constant 0 : index
    %5 = vector.load %arg1[%c0_5, %c3, %c0_6] : memref<1x12x132xbf16, #tpu.memory_space<vmem>>, vector<1x3x88xbf16>
    %6 = vector.shape_cast %5 : vector<1x3x88xbf16> to vector<3x88xbf16>
    %c3_7 = arith.constant 3 : index
    %c0_8 = arith.constant 0 : index
    %7 = vector.load %arg5[%c3_7, %c0_8] : memref<160x88xbf16, #tpu.memory_space<vmem>>, vector<3x88xbf16>
    tpu.vector_store %arg5[%c3_7, %c0_8], %6 {strides = array<i32>} : memref<160x88xbf16, #tpu.memory_space<vmem>>, vector<3x88xbf16>,
    %c0_9 = arith.constant 0 : index
    %c0_10 = arith.constant 0 : index
    %c1 = arith.constant 1 : index
    %8 = vector.load %arg1[%c0_9, %c0_10, %c1] : memref<1x12x132xbf16, #tpu.memory_space<vmem>>, vector<1x3x88xbf16>
    %9 = vector.shape_cast %8 : vector<1x3x88xbf16> to vector<3x88xbf16>
    %c6 = arith.constant 6 : index
    %c0_11 = arith.constant 0 : index
    %10 = vector.load %arg5[%c6, %c0_11] : memref<160x88xbf16, #tpu.memory_space<vmem>>, vector<3x88xbf16>
    tpu.vector_store %arg5[%c6, %c0_11], %9 {strides = array<i32>} : memref<160x88xbf16, #tpu.memory_space<vmem>>, vector<3x88xbf16>,
    %c0_12 = arith.constant 0 : index
    %c3_13 = arith.constant 3 : index
    %c1_14 = arith.constant 1 : index
    %11 = vector.load %arg1[%c0_12, %c3_13, %c1_14] : memref<1x12x132xbf16, #tpu.memory_space<vmem>>, vector<1x3x88xbf16>
    %12 = vector.shape_cast %11 : vector<1x3x88xbf16> to vector<3x88xbf16>
    %c9 = arith.constant 9 : index
    %c0_15 = arith.constant 0 : index
    %13 = vector.load %arg5[%c9, %c0_15] : memref<160x88xbf16, #tpu.memory_space<vmem>>, vector<3x88xbf16>
    tpu.vector_store %arg5[%c9, %c0_15], %12 {strides = array<i32>} : memref<160x88xbf16, #tpu.memory_space<vmem>>, vector<3x88xbf16>,
    %c0_16 = arith.constant 0 : index
    %c0_17 = arith.constant 0 : index
    %c2 = arith.constant 2 : index
    %14 = vector.load %arg1[%c0_16, %c0_17, %c2] : memref<1x12x132xbf16, #tpu.memory_space<vmem>>, vector<1x3x88xbf16>
    %15 = vector.shape_cast %14 : vector<1x3x88xbf16> to vector<3x88xbf16>
    %c12 = arith.constant 12 : index
    %c0_18 = arith.constant 0 : index
    %16 = vector.load %arg5[%c12, %c0_18] : memref<160x88xbf16, #tpu.memory_space<vmem>>, vector<3x88xbf16>
    tpu.vector_store %arg5[%c12, %c0_18], %15 {strides = array<i32>} : memref<160x88xbf16, #tpu.memory_space<vmem>>, vector<3x88xbf16>,
    %c0_19 = arith.constant 0 : index
    %c3_20 = arith.constant 3 : index
    %c2_21 = arith.constant 2 : index
    %17 = vector.load %arg1[%c0_19, %c3_20, %c2_21] : memref<1x12x132xbf16, #tpu.memory_space<vmem>>, vector<1x3x88xbf16>
    %18 = vector.shape_cast %17 : vector<1x3x88xbf16> to vector<3x88xbf16>
    %c15 = arith.constant 15 : index
    %c0_22 = arith.constant 0 : index
    %19 = vector.load %arg5[%c15, %c0_22] : memref<160x88xbf16, #tpu.memory_space<vmem>>, vector<3x88xbf16>
    tpu.vector_store %arg5[%c15, %c0_22], %18 {strides = array<i32>} : memref<160x88xbf16, #tpu.memory_space<vmem>>, vector<3x88xbf16>,
    %c0_23 = arith.constant 0 : index
    %c0_24 = arith.constant 0 : index
    %c3_25 = arith.constant 3 : index
    %20 = vector.load %arg1[%c0_23, %c0_24, %c3_25] : memref<1x12x132xbf16, #tpu.memory_space<vmem>>, vector<1x3x88xbf16>
    %21 = vector.shape_cast %20 : vector<1x3x88xbf16> to vector<3x88xbf16>
    %c18 = arith.constant 18 : index
    %c0_26 = arith.constant 0 : index
    %22 = vector.load %arg5[%c18, %c0_26] : memref<160x88xbf16, #tpu.memory_space<vmem>>, vector<3x88xbf16>
    tpu.vector_store %arg5[%c18, %c0_26], %21 {strides = array<i32>} : memref<160x88xbf16, #tpu.memory_space<vmem>>, vector<3x88xbf16>,
    %c0_27 = arith.constant 0 : index
    %c6_28 = arith.constant 6 : index
    %c0_29 = arith.constant 0 : index
    %23 = vector.load %arg1[%c0_27, %c6_28, %c0_29] : memref<1x12x132xbf16, #tpu.memory_space<vmem>>, vector<1x3x88xbf16>
    %24 = vector.shape_cast %23 : vector<1x3x88xbf16> to vector<3x88xbf16>
    %c21 = arith.constant 21 : index
    %c0_30 = arith.constant 0 : index
    %25 = vector.load %arg5[%c21, %c0_30] : memref<160x88xbf16, #tpu.memory_space<vmem>>, vector<3x88xbf16>
    tpu.vector_store %arg5[%c21, %c0_30], %24 {strides = array<i32>} : memref<160x88xbf16, #tpu.memory_space<vmem>>, vector<3x88xbf16>,
    %c0_31 = arith.constant 0 : index
    %c9_32 = arith.constant 9 : index
    %c0_33 = arith.constant 0 : index
    %26 = vector.load %arg1[%c0_31, %c9_32, %c0_33] : memref<1x12x132xbf16, #tpu.memory_space<vmem>>, vector<1x3x88xbf16>
    %27 = vector.shape_cast %26 : vector<1x3x88xbf16> to vector<3x88xbf16>
    %c24 = arith.constant 24 : index
    %c0_34 = arith.constant 0 : index
    %28 = vector.load %arg5[%c24, %c0_34] : memref<160x88xbf16, #tpu.memory_space<vmem>>, vector<3x88xbf16>
    tpu.vector_store %arg5[%c24, %c0_34], %27 {strides = array<i32>} : memref<160x88xbf16, #tpu.memory_space<vmem>>, vector<3x88xbf16>,
    %c0_35 = arith.constant 0 : index
    %c6_36 = arith.constant 6 : index
    %c1_37 = arith.constant 1 : index
    %29 = vector.load %arg1[%c0_35, %c6_36, %c1_37] : memref<1x12x132xbf16, #tpu.memory_space<vmem>>, vector<1x3x88xbf16>
    %30 = vector.shape_cast %29 : vector<1x3x88xbf16> to vector<3x88xbf16>
    %c27 = arith.constant 27 : index
    %c0_38 = arith.constant 0 : index
    %31 = vector.load %arg5[%c27, %c0_38] : memref<160x88xbf16, #tpu.memory_space<vmem>>, vector<3x88xbf16>
    tpu.vector_store %arg5[%c27, %c0_38], %30 {strides = array<i32>} : memref<160x88xbf16, #tpu.memory_space<vmem>>, vector<3x88xbf16>,
    %c0_39 = arith.constant 0 : index
    %c9_40 = arith.constant 9 : index
    %c1_41 = arith.constant 1 : index
    %32 = vector.load %arg1[%c0_39, %c9_40, %c1_41] : memref<1x12x132xbf16, #tpu.memory_space<vmem>>, vector<1x3x88xbf16>
    %33 = vector.shape_cast %32 : vector<1x3x88xbf16> to vector<3x88xbf16>
    %c30 = arith.constant 30 : index
    %c0_42 = arith.constant 0 : index
    %34 = vector.load %arg5[%c30, %c0_42] : memref<160x88xbf16, #tpu.memory_space<vmem>>, vector<3x88xbf16>
    tpu.vector_store %arg5[%c30, %c0_42], %33 {strides = array<i32>} : memref<160x88xbf16, #tpu.memory_space<vmem>>, vector<3x88xbf16>,
    %c0_43 = arith.constant 0 : index
    %c6_44 = arith.constant 6 : index
    %c2_45 = arith.constant 2 : index
    %35 = vector.load %arg1[%c0_43, %c6_44, %c2_45] : memref<1x12x132xbf16, #tpu.memory_space<vmem>>, vector<1x3x88xbf16>
    %36 = vector.shape_cast %35 : vector<1x3x88xbf16> to vector<3x88xbf16>
    %c33 = arith.constant 33 : index
    %c0_46 = arith.constant 0 : index
    %37 = vector.load %arg5[%c33, %c0_46] : memref<160x88xbf16, #tpu.memory_space<vmem>>, vector<3x88xbf16>
    tpu.vector_store %arg5[%c33, %c0_46], %36 {strides = array<i32>} : memref<160x88xbf16, #tpu.memory_space<vmem>>, vector<3x88xbf16>,
    %c0_47 = arith.constant 0 : index
    %c9_48 = arith.constant 9 : index
    %c2_49 = arith.constant 2 : index
    %38 = vector.load %arg1[%c0_47, %c9_48, %c2_49] : memref<1x12x132xbf16, #tpu.memory_space<vmem>>, vector<1x3x88xbf16>
    %39 = vector.shape_cast %38 : vector<1x3x88xbf16> to vector<3x88xbf16>
    %c36 = arith.constant 36 : index
    %c0_50 = arith.constant 0 : index
    %40 = vector.load %arg5[%c36, %c0_50] : memref<160x88xbf16, #tpu.memory_space<vmem>>, vector<3x88xbf16>
    tpu.vector_store %arg5[%c36, %c0_50], %39 {strides = array<i32>} : memref<160x88xbf16, #tpu.memory_space<vmem>>, vector<3x88xbf16>,
    %c0_51 = arith.constant 0 : index
    %c6_52 = arith.constant 6 : index
    %c3_53 = arith.constant 3 : index
    %41 = vector.load %arg1[%c0_51, %c6_52, %c3_53] : memref<1x12x132xbf16, #tpu.memory_space<vmem>>, vector<1x3x88xbf16>
    %42 = vector.shape_cast %41 : vector<1x3x88xbf16> to vector<3x88xbf16>
    %c39 = arith.constant 39 : index
    %c0_54 = arith.constant 0 : index
    %43 = vector.load %arg5[%c39, %c0_54] : memref<160x88xbf16, #tpu.memory_space<vmem>>, vector<3x88xbf16>
    tpu.vector_store %arg5[%c39, %c0_54], %42 {strides = array<i32>} : memref<160x88xbf16, #tpu.memory_space<vmem>>, vector<3x88xbf16>,
    %c0_55 = arith.constant 0 : index
    %c0_56 = arith.constant 0 : index
    %c11 = arith.constant 11 : index
    %44 = vector.load %arg1[%c0_55, %c0_56, %c11] : memref<1x12x132xbf16, #tpu.memory_space<vmem>>, vector<1x3x88xbf16>
    %45 = vector.shape_cast %44 : vector<1x3x88xbf16> to vector<3x88xbf16>
    %c42 = arith.constant 42 : index
    %c0_57 = arith.constant 0 : index
    %46 = vector.load %arg5[%c42, %c0_57] : memref<160x88xbf16, #tpu.memory_space<vmem>>, vector<3x88xbf16>
    tpu.vector_store %arg5[%c42, %c0_57], %45 {strides = array<i32>} : memref<160x88xbf16, #tpu.memory_space<vmem>>, vector<3x88xbf16>,
    %c0_58 = arith.constant 0 : index
    %c3_59 = arith.constant 3 : index
    %c11_60 = arith.constant 11 : index
    %47 = vector.load %arg1[%c0_58, %c3_59, %c11_60] : memref<1x12x132xbf16, #tpu.memory_space<vmem>>, vector<1x3x88xbf16>
    %48 = vector.shape_cast %47 : vector<1x3x88xbf16> to vector<3x88xbf16>
    %c45 = arith.constant 45 : index
    %c0_61 = arith.constant 0 : index
    %49 = vector.load %arg5[%c45, %c0_61] : memref<160x88xbf16, #tpu.memory_space<vmem>>, vector<3x88xbf16>
    tpu.vector_store %arg5[%c45, %c0_61], %48 {strides = array<i32>} : memref<160x88xbf16, #tpu.memory_space<vmem>>, vector<3x88xbf16>,
    %c0_62 = arith.constant 0 : index
    %c0_63 = arith.constant 0 : index
    %c12_64 = arith.constant 12 : index
    %50 = vector.load %arg1[%c0_62, %c0_63, %c12_64] : memref<1x12x132xbf16, #tpu.memory_space<vmem>>, vector<1x3x88xbf16>
    %51 = vector.shape_cast %50 : vector<1x3x88xbf16> to vector<3x88xbf16>
    %c48 = arith.constant 48 : index
    %c0_65 = arith.constant 0 : index
    %52 = vector.load %arg5[%c48, %c0_65] : memref<160x88xbf16, #tpu.memory_space<vmem>>, vector<3x88xbf16>
    tpu.vector_store %arg5[%c48, %c0_65], %51 {strides = array<i32>} : memref<160x88xbf16, #tpu.memory_space<vmem>>, vector<3x88xbf16>,
    %c0_66 = arith.constant 0 : index
    %c3_67 = arith.constant 3 : index
    %c12_68 = arith.constant 12 : index
    %53 = vector.load %arg1[%c0_66, %c3_67, %c12_68] : memref<1x12x132xbf16, #tpu.memory_space<vmem>>, vector<1x3x88xbf16>
    %54 = vector.shape_cast %53 : vector<1x3x88xbf16> to vector<3x88xbf16>
    %c51 = arith.constant 51 : index
    %c0_69 = arith.constant 0 : index
    %55 = vector.load %arg5[%c51, %c0_69] : memref<160x88xbf16, #tpu.memory_space<vmem>>, vector<3x88xbf16>
    tpu.vector_store %arg5[%c51, %c0_69], %54 {strides = array<i32>} : memref<160x88xbf16, #tpu.memory_space<vmem>>, vector<3x88xbf16>,
    %c0_70 = arith.constant 0 : index
    %c0_71 = arith.constant 0 : index
    %c13 = arith.constant 13 : index
    %56 = vector.load %arg1[%c0_70, %c0_71, %c13] : memref<1x12x132xbf16, #tpu.memory_space<vmem>>, vector<1x3x88xbf16>
    %57 = vector.shape_cast %56 : vector<1x3x88xbf16> to vector<3x88xbf16>
    %c54 = arith.constant 54 : index
    %c0_72 = arith.constant 0 : index
    %58 = vector.load %arg5[%c54, %c0_72] : memref<160x88xbf16, #tpu.memory_space<vmem>>, vector<3x88xbf16>
    tpu.vector_store %arg5[%c54, %c0_72], %57 {strides = array<i32>} : memref<160x88xbf16, #tpu.memory_space<vmem>>, vector<3x88xbf16>,
    %c0_73 = arith.constant 0 : index
    %c3_74 = arith.constant 3 : index
    %c13_75 = arith.constant 13 : index
    %59 = vector.load %arg1[%c0_73, %c3_74, %c13_75] : memref<1x12x132xbf16, #tpu.memory_space<vmem>>, vector<1x3x88xbf16>
    %60 = vector.shape_cast %59 : vector<1x3x88xbf16> to vector<3x88xbf16>
    %c57 = arith.constant 57 : index
    %c0_76 = arith.constant 0 : index
    %61 = vector.load %arg5[%c57, %c0_76] : memref<160x88xbf16, #tpu.memory_space<vmem>>, vector<3x88xbf16>
    tpu.vector_store %arg5[%c57, %c0_76], %60 {strides = array<i32>} : memref<160x88xbf16, #tpu.memory_space<vmem>>, vector<3x88xbf16>,
    %c0_77 = arith.constant 0 : index
    %c0_78 = arith.constant 0 : index
    %c14 = arith.constant 14 : index
    %62 = vector.load %arg1[%c0_77, %c0_78, %c14] : memref<1x12x132xbf16, #tpu.memory_space<vmem>>, vector<1x3x88xbf16>
    %63 = vector.shape_cast %62 : vector<1x3x88xbf16> to vector<3x88xbf16>
    %c60 = arith.constant 60 : index
    %c0_79 = arith.constant 0 : index
    %64 = vector.load %arg5[%c60, %c0_79] : memref<160x88xbf16, #tpu.memory_space<vmem>>, vector<3x88xbf16>
    tpu.vector_store %arg5[%c60, %c0_79], %63 {strides = array<i32>} : memref<160x88xbf16, #tpu.memory_space<vmem>>, vector<3x88xbf16>,
    %c0_80 = arith.constant 0 : index
    %c6_81 = arith.constant 6 : index
    %c11_82 = arith.constant 11 : index
    %65 = vector.load %arg1[%c0_80, %c6_81, %c11_82] : memref<1x12x132xbf16, #tpu.memory_space<vmem>>, vector<1x3x88xbf16>
    %66 = vector.shape_cast %65 : vector<1x3x88xbf16> to vector<3x88xbf16>
    %c63 = arith.constant 63 : index
    %c0_83 = arith.constant 0 : index
    %67 = vector.load %arg5[%c63, %c0_83] : memref<160x88xbf16, #tpu.memory_space<vmem>>, vector<3x88xbf16>
    tpu.vector_store %arg5[%c63, %c0_83], %66 {strides = array<i32>} : memref<160x88xbf16, #tpu.memory_space<vmem>>, vector<3x88xbf16>,
    %c0_84 = arith.constant 0 : index
    %c9_85 = arith.constant 9 : index
    %c11_86 = arith.constant 11 : index
    %68 = vector.load %arg1[%c0_84, %c9_85, %c11_86] : memref<1x12x132xbf16, #tpu.memory_space<vmem>>, vector<1x3x88xbf16>
    %69 = vector.shape_cast %68 : vector<1x3x88xbf16> to vector<3x88xbf16>
    %c66 = arith.constant 66 : index
    %c0_87 = arith.constant 0 : index
    %70 = vector.load %arg5[%c66, %c0_87] : memref<160x88xbf16, #tpu.memory_space<vmem>>, vector<3x88xbf16>
    tpu.vector_store %arg5[%c66, %c0_87], %69 {strides = array<i32>} : memref<160x88xbf16, #tpu.memory_space<vmem>>, vector<3x88xbf16>,
    %c0_88 = arith.constant 0 : index
    %c6_89 = arith.constant 6 : index
    %c12_90 = arith.constant 12 : index
    %71 = vector.load %arg1[%c0_88, %c6_89, %c12_90] : memref<1x12x132xbf16, #tpu.memory_space<vmem>>, vector<1x3x88xbf16>
    %72 = vector.shape_cast %71 : vector<1x3x88xbf16> to vector<3x88xbf16>
    %c69 = arith.constant 69 : index
    %c0_91 = arith.constant 0 : index
    %73 = vector.load %arg5[%c69, %c0_91] : memref<160x88xbf16, #tpu.memory_space<vmem>>, vector<3x88xbf16>
    tpu.vector_store %arg5[%c69, %c0_91], %72 {strides = array<i32>} : memref<160x88xbf16, #tpu.memory_space<vmem>>, vector<3x88xbf16>,
    %c0_92 = arith.constant 0 : index
    %c9_93 = arith.constant 9 : index
    %c12_94 = arith.constant 12 : index
    %74 = vector.load %arg1[%c0_92, %c9_93, %c12_94] : memref<1x12x132xbf16, #tpu.memory_space<vmem>>, vector<1x3x88xbf16>
    %75 = vector.shape_cast %74 : vector<1x3x88xbf16> to vector<3x88xbf16>
    %c72 = arith.constant 72 : index
    %c0_95 = arith.constant 0 : index
    %76 = vector.load %arg5[%c72, %c0_95] : memref<160x88xbf16, #tpu.memory_space<vmem>>, vector<3x88xbf16>
    tpu.vector_store %arg5[%c72, %c0_95], %75 {strides = array<i32>} : memref<160x88xbf16, #tpu.memory_space<vmem>>, vector<3x88xbf16>,
    %c0_96 = arith.constant 0 : index
    %c6_97 = arith.constant 6 : index
    %c13_98 = arith.constant 13 : index
    %77 = vector.load %arg1[%c0_96, %c6_97, %c13_98] : memref<1x12x132xbf16, #tpu.memory_space<vmem>>, vector<1x3x88xbf16>
    %78 = vector.shape_cast %77 : vector<1x3x88xbf16> to vector<3x88xbf16>
    %c75 = arith.constant 75 : index
    %c0_99 = arith.constant 0 : index
    %79 = vector.load %arg5[%c75, %c0_99] : memref<160x88xbf16, #tpu.memory_space<vmem>>, vector<3x88xbf16>
    tpu.vector_store %arg5[%c75, %c0_99], %78 {strides = array<i32>} : memref<160x88xbf16, #tpu.memory_space<vmem>>, vector<3x88xbf16>,
    %c0_100 = arith.constant 0 : index
    %c9_101 = arith.constant 9 : index
    %c13_102 = arith.constant 13 : index
    %80 = vector.load %arg1[%c0_100, %c9_101, %c13_102] : memref<1x12x132xbf16, #tpu.memory_space<vmem>>, vector<1x3x88xbf16>
    %81 = vector.shape_cast %80 : vector<1x3x88xbf16> to vector<3x88xbf16>
    %c78 = arith.constant 78 : index
    %c0_103 = arith.constant 0 : index
    %82 = vector.load %arg5[%c78, %c0_103] : memref<160x88xbf16, #tpu.memory_space<vmem>>, vector<3x88xbf16>
    tpu.vector_store %arg5[%c78, %c0_103], %81 {strides = array<i32>} : memref<160x88xbf16, #tpu.memory_space<vmem>>, vector<3x88xbf16>,
    %c0_104 = arith.constant 0 : index
    %c6_105 = arith.constant 6 : index
    %c14_106 = arith.constant 14 : index
    %83 = vector.load %arg1[%c0_104, %c6_105, %c14_106] : memref<1x12x132xbf16, #tpu.memory_space<vmem>>, vector<1x3x88xbf16>
    %84 = vector.shape_cast %83 : vector<1x3x88xbf16> to vector<3x88xbf16>
    %c81 = arith.constant 81 : index
    %c0_107 = arith.constant 0 : index
    %85 = vector.load %arg5[%c81, %c0_107] : memref<160x88xbf16, #tpu.memory_space<vmem>>, vector<3x88xbf16>
    tpu.vector_store %arg5[%c81, %c0_107], %84 {strides = array<i32>} : memref<160x88xbf16, #tpu.memory_space<vmem>>, vector<3x88xbf16>,
    %c0_108 = arith.constant 0 : index
    %c0_109 = arith.constant 0 : index
    %c22 = arith.constant 22 : index
    %86 = vector.load %arg1[%c0_108, %c0_109, %c22] : memref<1x12x132xbf16, #tpu.memory_space<vmem>>, vector<1x3x88xbf16>
    %87 = vector.shape_cast %86 : vector<1x3x88xbf16> to vector<3x88xbf16>
    %c84 = arith.constant 84 : index
    %c0_110 = arith.constant 0 : index
    %88 = vector.load %arg5[%c84, %c0_110] : memref<160x88xbf16, #tpu.memory_space<vmem>>, vector<3x88xbf16>
    tpu.vector_store %arg5[%c84, %c0_110], %87 {strides = array<i32>} : memref<160x88xbf16, #tpu.memory_space<vmem>>, vector<3x88xbf16>,
    %c0_111 = arith.constant 0 : index
    %c3_112 = arith.constant 3 : index
    %c22_113 = arith.constant 22 : index
    %89 = vector.load %arg1[%c0_111, %c3_112, %c22_113] : memref<1x12x132xbf16, #tpu.memory_space<vmem>>, vector<1x3x88xbf16>
    %90 = vector.shape_cast %89 : vector<1x3x88xbf16> to vector<3x88xbf16>
    %c87 = arith.constant 87 : index
    %c0_114 = arith.constant 0 : index
    %91 = vector.load %arg5[%c87, %c0_114] : memref<160x88xbf16, #tpu.memory_space<vmem>>, vector<3x88xbf16>
    tpu.vector_store %arg5[%c87, %c0_114], %90 {strides = array<i32>} : memref<160x88xbf16, #tpu.memory_space<vmem>>, vector<3x88xbf16>,
    %c0_115 = arith.constant 0 : index
    %c0_116 = arith.constant 0 : index
    %c23 = arith.constant 23 : index
    %92 = vector.load %arg1[%c0_115, %c0_116, %c23] : memref<1x12x132xbf16, #tpu.memory_space<vmem>>, vector<1x3x88xbf16>
    %93 = vector.shape_cast %92 : vector<1x3x88xbf16> to vector<3x88xbf16>
    %c90 = arith.constant 90 : index
    %c0_117 = arith.constant 0 : index
    %94 = vector.load %arg5[%c90, %c0_117] : memref<160x88xbf16, #tpu.memory_space<vmem>>, vector<3x88xbf16>
    tpu.vector_store %arg5[%c90, %c0_117], %93 {strides = array<i32>} : memref<160x88xbf16, #tpu.memory_space<vmem>>, vector<3x88xbf16>,
    %c0_118 = arith.constant 0 : index
    %c3_119 = arith.constant 3 : index
    %c23_120 = arith.constant 23 : index
    %95 = vector.load %arg1[%c0_118, %c3_119, %c23_120] : memref<1x12x132xbf16, #tpu.memory_space<vmem>>, vector<1x3x88xbf16>
    %96 = vector.shape_cast %95 : vector<1x3x88xbf16> to vector<3x88xbf16>
    %c93 = arith.constant 93 : index
    %c0_121 = arith.constant 0 : index
    %97 = vector.load %arg5[%c93, %c0_121] : memref<160x88xbf16, #tpu.memory_space<vmem>>, vector<3x88xbf16>
    tpu.vector_store %arg5[%c93, %c0_121], %96 {strides = array<i32>} : memref<160x88xbf16, #tpu.memory_space<vmem>>, vector<3x88xbf16>,
    %c0_122 = arith.constant 0 : index
    %c0_123 = arith.constant 0 : index
    %c24_124 = arith.constant 24 : index
    %98 = vector.load %arg1[%c0_122, %c0_123, %c24_124] : memref<1x12x132xbf16, #tpu.memory_space<vmem>>, vector<1x3x88xbf16>
    %99 = vector.shape_cast %98 : vector<1x3x88xbf16> to vector<3x88xbf16>
    %c96 = arith.constant 96 : index
    %c0_125 = arith.constant 0 : index
    %100 = vector.load %arg5[%c96, %c0_125] : memref<160x88xbf16, #tpu.memory_space<vmem>>, vector<3x88xbf16>
    tpu.vector_store %arg5[%c96, %c0_125], %99 {strides = array<i32>} : memref<160x88xbf16, #tpu.memory_space<vmem>>, vector<3x88xbf16>,
    %c0_126 = arith.constant 0 : index
    %c3_127 = arith.constant 3 : index
    %c24_128 = arith.constant 24 : index
    %101 = vector.load %arg1[%c0_126, %c3_127, %c24_128] : memref<1x12x132xbf16, #tpu.memory_space<vmem>>, vector<1x3x88xbf16>
    %102 = vector.shape_cast %101 : vector<1x3x88xbf16> to vector<3x88xbf16>
    %c99 = arith.constant 99 : index
    %c0_129 = arith.constant 0 : index
    %103 = vector.load %arg5[%c99, %c0_129] : memref<160x88xbf16, #tpu.memory_space<vmem>>, vector<3x88xbf16>
    tpu.vector_store %arg5[%c99, %c0_129], %102 {strides = array<i32>} : memref<160x88xbf16, #tpu.memory_space<vmem>>, vector<3x88xbf16>,
    %c0_130 = arith.constant 0 : index
    %c0_131 = arith.constant 0 : index
    %c25 = arith.constant 25 : index
    %104 = vector.load %arg1[%c0_130, %c0_131, %c25] : memref<1x12x132xbf16, #tpu.memory_space<vmem>>, vector<1x3x88xbf16>
    %105 = vector.shape_cast %104 : vector<1x3x88xbf16> to vector<3x88xbf16>
    %c102 = arith.constant 102 : index
    %c0_132 = arith.constant 0 : index
    %106 = vector.load %arg5[%c102, %c0_132] : memref<160x88xbf16, #tpu.memory_space<vmem>>, vector<3x88xbf16>
    tpu.vector_store %arg5[%c102, %c0_132], %105 {strides = array<i32>} : memref<160x88xbf16, #tpu.memory_space<vmem>>, vector<3x88xbf16>,
    %c0_133 = arith.constant 0 : index
    %c6_134 = arith.constant 6 : index
    %c22_135 = arith.constant 22 : index
    %107 = vector.load %arg1[%c0_133, %c6_134, %c22_135] : memref<1x12x132xbf16, #tpu.memory_space<vmem>>, vector<1x3x88xbf16>
    %108 = vector.shape_cast %107 : vector<1x3x88xbf16> to vector<3x88xbf16>
    %c105 = arith.constant 105 : index
    %c0_136 = arith.constant 0 : index
    %109 = vector.load %arg5[%c105, %c0_136] : memref<160x88xbf16, #tpu.memory_space<vmem>>, vector<3x88xbf16>
    tpu.vector_store %arg5[%c105, %c0_136], %108 {strides = array<i32>} : memref<160x88xbf16, #tpu.memory_space<vmem>>, vector<3x88xbf16>,
    %c0_137 = arith.constant 0 : index
    %c9_138 = arith.constant 9 : index
    %c22_139 = arith.constant 22 : index
    %110 = vector.load %arg1[%c0_137, %c9_138, %c22_139] : memref<1x12x132xbf16, #tpu.memory_space<vmem>>, vector<1x3x88xbf16>
    %111 = vector.shape_cast %110 : vector<1x3x88xbf16> to vector<3x88xbf16>
    %c108 = arith.constant 108 : index
    %c0_140 = arith.constant 0 : index
    %112 = vector.load %arg5[%c108, %c0_140] : memref<160x88xbf16, #tpu.memory_space<vmem>>, vector<3x88xbf16>
    tpu.vector_store %arg5[%c108, %c0_140], %111 {strides = array<i32>} : memref<160x88xbf16, #tpu.memory_space<vmem>>, vector<3x88xbf16>,
    %c0_141 = arith.constant 0 : index
    %c6_142 = arith.constant 6 : index
    %c23_143 = arith.constant 23 : index
    %113 = vector.load %arg1[%c0_141, %c6_142, %c23_143] : memref<1x12x132xbf16, #tpu.memory_space<vmem>>, vector<1x3x88xbf16>
    %114 = vector.shape_cast %113 : vector<1x3x88xbf16> to vector<3x88xbf16>
    %c111 = arith.constant 111 : index
    %c0_144 = arith.constant 0 : index
    %115 = vector.load %arg5[%c111, %c0_144] : memref<160x88xbf16, #tpu.memory_space<vmem>>, vector<3x88xbf16>
    tpu.vector_store %arg5[%c111, %c0_144], %114 {strides = array<i32>} : memref<160x88xbf16, #tpu.memory_space<vmem>>, vector<3x88xbf16>,
    %c0_145 = arith.constant 0 : index
    %c9_146 = arith.constant 9 : index
    %c23_147 = arith.constant 23 : index
    %116 = vector.load %arg1[%c0_145, %c9_146, %c23_147] : memref<1x12x132xbf16, #tpu.memory_space<vmem>>, vector<1x3x88xbf16>
    %117 = vector.shape_cast %116 : vector<1x3x88xbf16> to vector<3x88xbf16>
    %c114 = arith.constant 114 : index
    %c0_148 = arith.constant 0 : index
    %118 = vector.load %arg5[%c114, %c0_148] : memref<160x88xbf16, #tpu.memory_space<vmem>>, vector<3x88xbf16>
    tpu.vector_store %arg5[%c114, %c0_148], %117 {strides = array<i32>} : memref<160x88xbf16, #tpu.memory_space<vmem>>, vector<3x88xbf16>,
    %c0_149 = arith.constant 0 : index
    %c6_150 = arith.constant 6 : index
    %c24_151 = arith.constant 24 : index
    %119 = vector.load %arg1[%c0_149, %c6_150, %c24_151] : memref<1x12x132xbf16, #tpu.memory_space<vmem>>, vector<1x3x88xbf16>
    %120 = vector.shape_cast %119 : vector<1x3x88xbf16> to vector<3x88xbf16>
    %c117 = arith.constant 117 : index
    %c0_152 = arith.constant 0 : index
    %121 = vector.load %arg5[%c117, %c0_152] : memref<160x88xbf16, #tpu.memory_space<vmem>>, vector<3x88xbf16>
    tpu.vector_store %arg5[%c117, %c0_152], %120 {strides = array<i32>} : memref<160x88xbf16, #tpu.memory_space<vmem>>, vector<3x88xbf16>,
    %c0_153 = arith.constant 0 : index
    %c9_154 = arith.constant 9 : index
    %c24_155 = arith.constant 24 : index
    %122 = vector.load %arg1[%c0_153, %c9_154, %c24_155] : memref<1x12x132xbf16, #tpu.memory_space<vmem>>, vector<1x3x88xbf16>
    %123 = vector.shape_cast %122 : vector<1x3x88xbf16> to vector<3x88xbf16>
    %c120 = arith.constant 120 : index
    %c0_156 = arith.constant 0 : index
    %124 = vector.load %arg5[%c120, %c0_156] : memref<160x88xbf16, #tpu.memory_space<vmem>>, vector<3x88xbf16>
    tpu.vector_store %arg5[%c120, %c0_156], %123 {strides = array<i32>} : memref<160x88xbf16, #tpu.memory_space<vmem>>, vector<3x88xbf16>,
    %c0_157 = arith.constant 0 : index
    %c6_158 = arith.constant 6 : index
    %c25_159 = arith.constant 25 : index
    %125 = vector.load %arg1[%c0_157, %c6_158, %c25_159] : memref<1x12x132xbf16, #tpu.memory_space<vmem>>, vector<1x3x88xbf16>
    %126 = vector.shape_cast %125 : vector<1x3x88xbf16> to vector<3x88xbf16>
    %c123 = arith.constant 123 : index
    %c0_160 = arith.constant 0 : index
    %127 = vector.load %arg5[%c123, %c0_160] : memref<160x88xbf16, #tpu.memory_space<vmem>>, vector<3x88xbf16>
    tpu.vector_store %arg5[%c123, %c0_160], %126 {strides = array<i32>} : memref<160x88xbf16, #tpu.memory_space<vmem>>, vector<3x88xbf16>,
    %c0_161 = arith.constant 0 : index
    %c0_162 = arith.constant 0 : index
    %c33_163 = arith.constant 33 : index
    %128 = vector.load %arg1[%c0_161, %c0_162, %c33_163] : memref<1x12x132xbf16, #tpu.memory_space<vmem>>, vector<1x3x88xbf16>
    %129 = vector.shape_cast %128 : vector<1x3x88xbf16> to vector<3x88xbf16>
    %c126 = arith.constant 126 : index
    %c0_164 = arith.constant 0 : index
    %130 = vector.load %arg5[%c126, %c0_164] : memref<160x88xbf16, #tpu.memory_space<vmem>>, vector<3x88xbf16>
    tpu.vector_store %arg5[%c126, %c0_164], %129 {strides = array<i32>} : memref<160x88xbf16, #tpu.memory_space<vmem>>, vector<3x88xbf16>,
    %c0_165 = arith.constant 0 : index
    %c3_166 = arith.constant 3 : index
    %c33_167 = arith.constant 33 : index
    %131 = vector.load %arg1[%c0_165, %c3_166, %c33_167] : memref<1x12x132xbf16, #tpu.memory_space<vmem>>, vector<1x3x88xbf16>
    %132 = vector.shape_cast %131 : vector<1x3x88xbf16> to vector<3x88xbf16>
    %c129 = arith.constant 129 : index
    %c0_168 = arith.constant 0 : index
    %133 = vector.load %arg5[%c129, %c0_168] : memref<160x88xbf16, #tpu.memory_space<vmem>>, vector<3x88xbf16>
    tpu.vector_store %arg5[%c129, %c0_168], %132 {strides = array<i32>} : memref<160x88xbf16, #tpu.memory_space<vmem>>, vector<3x88xbf16>,
    %c0_169 = arith.constant 0 : index
    %c0_170 = arith.constant 0 : index
    %c34 = arith.constant 34 : index
    %134 = vector.load %arg1[%c0_169, %c0_170, %c34] : memref<1x12x132xbf16, #tpu.memory_space<vmem>>, vector<1x3x88xbf16>
    %135 = vector.shape_cast %134 : vector<1x3x88xbf16> to vector<3x88xbf16>
    %c132 = arith.constant 132 : index
    %c0_171 = arith.constant 0 : index
    %136 = vector.load %arg5[%c132, %c0_171] : memref<160x88xbf16, #tpu.memory_space<vmem>>, vector<3x88xbf16>
    tpu.vector_store %arg5[%c132, %c0_171], %135 {strides = array<i32>} : memref<160x88xbf16, #tpu.memory_space<vmem>>, vector<3x88xbf16>,
    %c0_172 = arith.constant 0 : index
    %c3_173 = arith.constant 3 : index
    %c34_174 = arith.constant 34 : index
    %137 = vector.load %arg1[%c0_172, %c3_173, %c34_174] : memref<1x12x132xbf16, #tpu.memory_space<vmem>>, vector<1x3x88xbf16>
    %138 = vector.shape_cast %137 : vector<1x3x88xbf16> to vector<3x88xbf16>
    %c135 = arith.constant 135 : index
    %c0_175 = arith.constant 0 : index
    %139 = vector.load %arg5[%c135, %c0_175] : memref<160x88xbf16, #tpu.memory_space<vmem>>, vector<3x88xbf16>
    tpu.vector_store %arg5[%c135, %c0_175], %138 {strides = array<i32>} : memref<160x88xbf16, #tpu.memory_space<vmem>>, vector<3x88xbf16>,
    %c0_176 = arith.constant 0 : index
    %c0_177 = arith.constant 0 : index
    %c35 = arith.constant 35 : index
    %140 = vector.load %arg1[%c0_176, %c0_177, %c35] : memref<1x12x132xbf16, #tpu.memory_space<vmem>>, vector<1x3x88xbf16>
    %141 = vector.shape_cast %140 : vector<1x3x88xbf16> to vector<3x88xbf16>
    %c138 = arith.constant 138 : index
    %c0_178 = arith.constant 0 : index
    %142 = vector.load %arg5[%c138, %c0_178] : memref<160x88xbf16, #tpu.memory_space<vmem>>, vector<3x88xbf16>
    tpu.vector_store %arg5[%c138, %c0_178], %141 {strides = array<i32>} : memref<160x88xbf16, #tpu.memory_space<vmem>>, vector<3x88xbf16>,
    %c0_179 = arith.constant 0 : index
    %c3_180 = arith.constant 3 : index
    %c35_181 = arith.constant 35 : index
    %143 = vector.load %arg1[%c0_179, %c3_180, %c35_181] : memref<1x12x132xbf16, #tpu.memory_space<vmem>>, vector<1x3x88xbf16>
    %144 = vector.shape_cast %143 : vector<1x3x88xbf16> to vector<3x88xbf16>
    %c141 = arith.constant 141 : index
    %c0_182 = arith.constant 0 : index
    %145 = vector.load %arg5[%c141, %c0_182] : memref<160x88xbf16, #tpu.memory_space<vmem>>, vector<3x88xbf16>
    tpu.vector_store %arg5[%c141, %c0_182], %144 {strides = array<i32>} : memref<160x88xbf16, #tpu.memory_space<vmem>>, vector<3x88xbf16>,
    %c0_183 = arith.constant 0 : index
    %c0_184 = arith.constant 0 : index
    %c36_185 = arith.constant 36 : index
    %146 = vector.load %arg1[%c0_183, %c0_184, %c36_185] : memref<1x12x132xbf16, #tpu.memory_space<vmem>>, vector<1x3x88xbf16>
    %147 = vector.shape_cast %146 : vector<1x3x88xbf16> to vector<3x88xbf16>
    %c144 = arith.constant 144 : index
    %c0_186 = arith.constant 0 : index
    %148 = vector.load %arg5[%c144, %c0_186] : memref<160x88xbf16, #tpu.memory_space<vmem>>, vector<3x88xbf16>
    tpu.vector_store %arg5[%c144, %c0_186], %147 {strides = array<i32>} : memref<160x88xbf16, #tpu.memory_space<vmem>>, vector<3x88xbf16>,
    %c0_187 = arith.constant 0 : index
    %c0_188 = arith.constant 0 : index
    %149 = vector.load %arg2[%c0_187, %c0_188] : memref<64x160xbf16, #tpu.memory_space<vmem>>, vector<64x160xbf16>
    %c0_189 = arith.constant 0 : index
    %c0_190 = arith.constant 0 : index
    %150 = vector.load %arg5[%c0_189, %c0_190] : memref<160x88xbf16, #tpu.memory_space<vmem>>, vector<160x88xbf16>
    %cst_191 = arith.constant dense<0.000000e+00> : vector<64x88xf32>
    %151 = tpu.matmul %149, %150, %cst_191 {dimension_numbers = #tpu.dot_dimension_numbers<[1], [0], [0], [1], [0, 0, 1, 1], [], []>} : vector<64x160xbf16>, vector<160x88xbf16>, vector<64x88xf32> -> vector<64x88xf32>
    %c0_192 = arith.constant 0 : index
    %c0_193 = arith.constant 0 : index
    %152 = vector.load %arg3[%c0_192, %c0_193] : memref<64x1xf32, #tpu.memory_space<vmem>>, vector<64x1xf32>
    %153 = vector.broadcast %152 : vector<64x1xf32> to vector<64x88xf32>
    %154 = arith.addf %151, %153 : vector<64x88xf32>
    %cst_194 = arith.constant 0.000000e+00 : f32
    %155 = vector.broadcast %cst_194 : f32 to vector<64x88xf32>
    %156 = arith.maximumf %154, %155 : vector<64x88xf32>
    %157 = arith.truncf %156 : vector<64x88xf32> to vector<64x88xbf16>
    %158 = vector.extract_strided_slice %157 {offsets = [0, 0], sizes = [64, 8], strides = [1, 1]} : vector<64x88xbf16> to vector<64x8xbf16>
    %c0_195 = arith.constant 0 : index
    %c0_196 = arith.constant 0 : index
    %c0_197 = arith.constant 0 : index
    %159 = vector.load %arg4[%c0_195, %c0_196, %c0_197] : memref<1x64x64xbf16, #tpu.memory_space<vmem>>, vector<1x64x8xbf16>
    %160 = vector.shape_cast %159 : vector<1x64x8xbf16> to vector<64x8xbf16>
    %161 = vector.shape_cast %158 : vector<64x8xbf16> to vector<1x64x8xbf16>
    tpu.vector_store %arg4[%c0_195, %c0_196, %c0_197], %161 {strides = array<i32>} : memref<1x64x64xbf16, #tpu.memory_space<vmem>>, vector<1x64x8xbf16>,
    %162 = vector.extract_strided_slice %157 {offsets = [0, 11], sizes = [64, 8], strides = [1, 1]} : vector<64x88xbf16> to vector<64x8xbf16>
    %c0_198 = arith.constant 0 : index
    %c0_199 = arith.constant 0 : index
    %c8 = arith.constant 8 : index
    %163 = vector.load %arg4[%c0_198, %c0_199, %c8] : memref<1x64x64xbf16, #tpu.memory_space<vmem>>, vector<1x64x8xbf16>
    %164 = vector.shape_cast %163 : vector<1x64x8xbf16> to vector<64x8xbf16>
    %165 = vector.shape_cast %162 : vector<64x8xbf16> to vector<1x64x8xbf16>
    tpu.vector_store %arg4[%c0_198, %c0_199, %c8], %165 {strides = array<i32>} : memref<1x64x64xbf16, #tpu.memory_space<vmem>>, vector<1x64x8xbf16>,
    %166 = vector.extract_strided_slice %157 {offsets = [0, 22], sizes = [64, 8], strides = [1, 1]} : vector<64x88xbf16> to vector<64x8xbf16>
    %c0_200 = arith.constant 0 : index
    %c0_201 = arith.constant 0 : index
    %c16 = arith.constant 16 : index
    %167 = vector.load %arg4[%c0_200, %c0_201, %c16] : memref<1x64x64xbf16, #tpu.memory_space<vmem>>, vector<1x64x8xbf16>
    %168 = vector.shape_cast %167 : vector<1x64x8xbf16> to vector<64x8xbf16>
    %169 = vector.shape_cast %166 : vector<64x8xbf16> to vector<1x64x8xbf16>
    tpu.vector_store %arg4[%c0_200, %c0_201, %c16], %169 {strides = array<i32>} : memref<1x64x64xbf16, #tpu.memory_space<vmem>>, vector<1x64x8xbf16>,
    %170 = vector.extract_strided_slice %157 {offsets = [0, 33], sizes = [64, 8], strides = [1, 1]} : vector<64x88xbf16> to vector<64x8xbf16>
    %c0_202 = arith.constant 0 : index
    %c0_203 = arith.constant 0 : index
    %c24_204 = arith.constant 24 : index
    %171 = vector.load %arg4[%c0_202, %c0_203, %c24_204] : memref<1x64x64xbf16, #tpu.memory_space<vmem>>, vector<1x64x8xbf16>
    %172 = vector.shape_cast %171 : vector<1x64x8xbf16> to vector<64x8xbf16>
    %173 = vector.shape_cast %170 : vector<64x8xbf16> to vector<1x64x8xbf16>
    tpu.vector_store %arg4[%c0_202, %c0_203, %c24_204], %173 {strides = array<i32>} : memref<1x64x64xbf16, #tpu.memory_space<vmem>>, vector<1x64x8xbf16>,
    %174 = vector.extract_strided_slice %157 {offsets = [0, 44], sizes = [64, 8], strides = [1, 1]} : vector<64x88xbf16> to vector<64x8xbf16>
    %c0_205 = arith.constant 0 : index
    %c0_206 = arith.constant 0 : index
    %c32 = arith.constant 32 : index
    %175 = vector.load %arg4[%c0_205, %c0_206, %c32] : memref<1x64x64xbf16, #tpu.memory_space<vmem>>, vector<1x64x8xbf16>
    %176 = vector.shape_cast %175 : vector<1x64x8xbf16> to vector<64x8xbf16>
    %177 = vector.shape_cast %174 : vector<64x8xbf16> to vector<1x64x8xbf16>
    tpu.vector_store %arg4[%c0_205, %c0_206, %c32], %177 {strides = array<i32>} : memref<1x64x64xbf16, #tpu.memory_space<vmem>>, vector<1x64x8xbf16>,
    %178 = vector.extract_strided_slice %157 {offsets = [0, 55], sizes = [64, 8], strides = [1, 1]} : vector<64x88xbf16> to vector<64x8xbf16>
    %c0_207 = arith.constant 0 : index
    %c0_208 = arith.constant 0 : index
    %c40 = arith.constant 40 : index
    %179 = vector.load %arg4[%c0_207, %c0_208, %c40] : memref<1x64x64xbf16, #tpu.memory_space<vmem>>, vector<1x64x8xbf16>
    %180 = vector.shape_cast %179 : vector<1x64x8xbf16> to vector<64x8xbf16>
    %181 = vector.shape_cast %178 : vector<64x8xbf16> to vector<1x64x8xbf16>
    tpu.vector_store %arg4[%c0_207, %c0_208, %c40], %181 {strides = array<i32>} : memref<1x64x64xbf16, #tpu.memory_space<vmem>>, vector<1x64x8xbf16>,
    %182 = vector.extract_strided_slice %157 {offsets = [0, 66], sizes = [64, 8], strides = [1, 1]} : vector<64x88xbf16> to vector<64x8xbf16>
    %c0_209 = arith.constant 0 : index
    %c0_210 = arith.constant 0 : index
    %c48_211 = arith.constant 48 : index
    %183 = vector.load %arg4[%c0_209, %c0_210, %c48_211] : memref<1x64x64xbf16, #tpu.memory_space<vmem>>, vector<1x64x8xbf16>
    %184 = vector.shape_cast %183 : vector<1x64x8xbf16> to vector<64x8xbf16>
    %185 = vector.shape_cast %182 : vector<64x8xbf16> to vector<1x64x8xbf16>
    tpu.vector_store %arg4[%c0_209, %c0_210, %c48_211], %185 {strides = array<i32>} : memref<1x64x64xbf16, #tpu.memory_space<vmem>>, vector<1x64x8xbf16>,
    %186 = vector.extract_strided_slice %157 {offsets = [0, 77], sizes = [64, 8], strides = [1, 1]} : vector<64x88xbf16> to vector<64x8xbf16>
    %c0_212 = arith.constant 0 : index
    %c0_213 = arith.constant 0 : index
    %c56 = arith.constant 56 : index
    %187 = vector.load %arg4[%c0_212, %c0_213, %c56] : memref<1x64x64xbf16, #tpu.memory_space<vmem>>, vector<1x64x8xbf16>
    %188 = vector.shape_cast %187 : vector<1x64x8xbf16> to vector<64x8xbf16>
    %189 = vector.shape_cast %186 : vector<64x8xbf16> to vector<1x64x8xbf16>
    tpu.vector_store %arg4[%c0_212, %c0_213, %c56], %189 {strides = array<i32>} : memref<1x64x64xbf16, #tpu.memory_space<vmem>>, vector<1x64x8xbf16>,
    return
  }
  func.func @transform_0(%arg0: i32) -> (i32, i32, i32) {
    %c0_i32 = arith.constant 0 : i32
    %c0_i32_0 = arith.constant 0 : i32
    %c0_i32_1 = arith.constant 0 : i32
    return %arg0, %c0_i32, %c0_i32_0 : i32, i32, i32
  }
  func.func @transform_1(%arg0: i32) -> (i32, i32) {
    %c0_i32 = arith.constant 0 : i32
    %c0_i32_0 = arith.constant 0 : i32
    %c0_i32_1 = arith.constant 0 : i32
    return %c0_i32, %c0_i32_0 : i32, i32
  }
  func.func @transform_2(%arg0: i32) -> (i32, i32) {
    %c0_i32 = arith.constant 0 : i32
    %c0_i32_0 = arith.constant 0 : i32
    %c0_i32_1 = arith.constant 0 : i32
    return %c0_i32, %c0_i32_0 : i32, i32
  }
  func.func @transform_3(%arg0: i32) -> (i32, i32, i32) {
    %c0_i32 = arith.constant 0 : i32
    %c0_i32_0 = arith.constant 0 : i32
    %c0_i32_1 = arith.constant 0 : i32
    return %arg0, %c0_i32, %c0_i32_0 : i32, i32, i32
  }
}

</mosaic_0001>

<bundles_post_ra>
// kernel: encoder_layer0.1
= control target key start
LH: loop header
LB: loop body
LE: loop exit
PB: predicated region body
PF: predicated region fallthrough
CT: control target
= control target key end

     0   :  { %s1693_s12 = smov 0   ;;  %s2303_s0 = inlined_call_operand.vmem [shape: bf16[2,12,132], index: 0, kind: input, shape index: {}]   ;;  %s2304_s1 = inlined_call_operand.vmem [shape: bf16[64,160], index: 1, kind: input, shape index: {}]   ;;  %s2305_s2 = inlined_call_operand.vmem [shape: f32[64,1], index: 2, kind: input, shape index: {}]   ;;  %s2306_s3 = inlined_call_operand.vmem [shape: bf16[2,64,64], index: 3, kind: output, shape index: {}]  }
   0x1 LB: > { %s1446_s13 = sadd.s32 4294967295, %s1650_s12   ;;  %p1450_p0 = scmp.ge.s32.totalorder %s1650_s12, 1  ;;  %s1650_s12 = sphi %s1693_s12, %s13_s12  }
   0x2   : > { %p137_p1 = scmp.lt.s32.totalorder %s1650_s12, 3 }
   0x4   : > { %p138_p2 = pnand %p1450_p0, %p137_p1 }
   0x5   : > { %p161_p3 = scmp.lt.s32.totalorder (!%p138_p2), %s1446_s13, 1  ;;  %vm172_vm0 = vcmask (!%p138_p2), 719873   ;;  %vm173_vm1 = vsmask.f32 (!%p138_p2), 7942  ;;  %v175_v0 = vld [vmem:[#allocation2 + $0x48] sm:$0xfe] (!%p138_p2) }
   0x6   : > { %141 = sbr.rel (%p138_p2) target bundleno = 687 (0x2af), region = 32  ;;  %vm174_vm2 = vmand (!%p138_p2), %vm172_vm0, %vm173_vm1  ;;  %s1652_s18 = smov (!%p138_p2), 125   ;;  %vm2310_vm3 = vcmask (!%p138_p2), 713728   ;;  %vm180_vm4 = vsmask.f32 (!%p138_p2), 1280  ;;  %vm186_vm7 = vcmask (!%p138_p2), 714753  }
   0x7   : > { %v176_v1 = vsel (!%p138_p2), %vm174_vm2, 0, %v175_v0  ;;  %s1653_s19 = smov (!%p138_p2), 127   ;;  %s1654_s20 = smov (!%p138_p2), 117   ;;  %vm1787_vm5 = vmand (!%p138_p2), %vm2310_vm3, %vm180_vm4  ;;  %vm296_vm6 = vsmask.f32 (!%p138_p2), 5376  ;;  %vm213_vm8 = vcmask (!%p138_p2), 717828  }
   0x8   : > { %177 = vst [vmem:[#allocation2 + $0x48] sm:$0xfe] (!%p138_p2), %v176_v1  ;;  %s1655_s21 = smov (!%p138_p2), 126   ;;  %s1656_s22 = smov (!%p138_p2), 115   ;;  %vm1804_vm9 = vmand (!%p138_p2), %vm213_vm8, %vm296_vm6  ;;  %vm2307_vm11 = vcmask (!%p138_p2), 261120   ;;  %vm2308_vm13 = vcmask (!%p138_p2), 716803  }
   0x9   : > { %s1657_s23 = smov (!%p138_p2), 116   ;;  %s1658_s24 = smov (!%p138_p2), 114   ;;  %vm1812_vm10 = vmand (!%p138_p2), %vm186_vm7, %vm173_vm1  ;;  %vm257_vm12 = vsmask.f32 (!%p138_p2), 2304  ;;  %vm200_vm14 = vsmask.f32 (!%p138_p2), 4352 }
   0xa   : > { %s1659_s25 = smov (!%p138_p2), 106   ;;  %s1660_s26 = smov (!%p138_p2), 105   ;;  %vm1864_vm15 = vmand (!%p138_p2), %vm186_vm7, %vm257_vm12  ;;  %vm2311_vm1 = vcmask (!%p138_p2), 718853   ;;  %vm424_vm2 = vsmask.f32 (!%p138_p2), 6400  ;;  %vm2309_vm4 = vcmask (!%p138_p2), 719878  }
   0xb   : > { %s1662_s27 = smov (!%p138_p2), 103   ;;  %s1663_s28 = smov (!%p138_p2), 104   ;;  %vm1869_vm0 = vmand (!%p138_p2), %vm2308_vm13, %vm200_vm14  ;;  %vm228_vm6 = vsmask.f32 (!%p138_p2), 7424  ;;  %vm277_vm14 = vcmask (!%p138_p2), 715778  }
   0xc   : > { %s1664_s29 = smov (!%p138_p2), 94   ;;  %s1665_s30 = smov (!%p138_p2), 95   ;;  %vm1881_vm7 = vmand (!%p138_p2), %vm2311_vm1, %vm424_vm2  ;;  %vm214_vm2 = vsmask.f32 (!%p138_p2), 7954  ;;  %vm346_vm13 = vsmask.f32 (!%p138_p2), 256 }
   0xd   : > { %s2368_s13 = smov (!%p161_p3, %s1446_s13), 1  ;;  %s1666_s4 = smov 93   ;;  %vm1886_vm12 = vmand %vm2309_vm4, %vm228_vm6  ;;  %vm2316_vm6 = vcmask 712704   ;;  %vm389_vm1 = vsmask.f32 3328 }
   0xe   : > { %s1524_s14 = sshll.u32 %s2368_s13, 4  ;;  %s1667_s9 = smov 92   ;;  %vm1903_vm3 = vmand %vm213_vm8, %vm214_vm2 }
   0xf   : > { %s1708_s17 = scalar_lea.vmem %s2303_s0, %s1524_s14  ;;  %vm1918_vm8 = vmand %vm277_vm14, %vm389_vm1 }
  0x10   : > { %v1585_v2 = vld [vmem:[%s1708_s17] ss:$0 sps:$4 sm:$0x33]   ;;  %v1591_v12 = vld [vmem:[%s1708_s17 + $0x8] ss:$0 sps:$4 sm:$0x33]  }
  0x11   : > { %v1586_v3 = vld [vmem:[%s1708_s17] ss:$0 sps:$4 sm:$0x33]   ;;  %v253_v4 = vrot.slane %v1585_v2, 7  ;;  %v330_v16 = vshrl.u32 %v1591_v12, 16  ;;  %v333_v29 = vshll.u32 %v1591_v12, 16 }
  0x12   : > { %v1587_v5 = vld [vmem:[%s1708_s17] ss:$0 sps:$4 sm:$0x33]   ;;  %v195_v6 = vrot.slane %v1586_v3, 5 }
  0x13   : > { %v1588_v7 = vld [vmem:[%s1708_s17] ss:$0 sps:$4 sm:$0x33]   ;;  %254 = vrot.lane.b32.xlu1 %v253_v4, %s1652_s18  ;;  %v420_v8 = vrot.slane %v1587_v5, 3  ;;  %v332_v22 = vrot.slane %v330_v16, 1  ;;  %v335_v37 = vrot.slane %v333_v29, 2 }
  0x14   : > { %v1589_v9 = vld [vmem:[%s1708_s17] ss:$0 sps:$4 sm:$0x66]   ;;  %196 = vrot.lane.b32.xlu0 %v195_v6, %s1653_s19  ;;  %v223_v10 = vrot.slane %v1588_v7, 2 }
  0x15   : > { %v1590_v11 = vld [vmem:[%s1708_s17] ss:$0 sps:$4 sm:$0x66]   ;;  %v1592_v13 = vld [vmem:[%s1708_s17 + $0x8] ss:$0 sps:$4 sm:$0x33]   ;;  %v336_v50 = vor.u32 %v335_v37, %v332_v22 }
  0x16   : > { %v237_v14 = vrot.slane %v1589_v9, 2  ;;  %v209_v15 = vrot.slane %v1590_v11, 5  ;;  %v379_v17 = vshrl.u32 %v1592_v13, 16  ;;  %v382_v18 = vshll.u32 %v1592_v13, 16 }
  0x17   : > { %421 = vrot.lane.b32.xlu1 %v420_v8, %s1654_s20  ;;  %v1593_v19 = vld [vmem:[%s1708_s17] ss:$0 sps:$4 sm:$0x33]   ;;  %v1595_v23 = vld [vmem:[%s1708_s17] ss:$8 sps:$4 sm:$0x18]  }
  0x18   : > { %224 = vrot.lane.b32.xlu0 %v223_v10, %s1655_s21  ;;  %v381_v20 = vrot.slane %v379_v17, 6  ;;  %v384_v21 = vrot.slane %v382_v18, 7  ;;  %v1596_v25 = vld [vmem:[%s1708_s17] ss:$0 sps:$4 sm:$0x33]   ;;  %v309_v27 = vshrl.u32 %v1595_v23, 16 }
  0x19   : > { %v1597_v26 = vld [vmem:[%s1708_s17 + $0x8] ss:$0 sps:$4 sm:$0x33]   ;;  %v312_v28 = vshll.u32 %v1595_v23, 16  ;;  %v466_v30 = vrot.slane %v1593_v19, 5  ;;  %v488_v38 = vrot.slane %v1596_v25, 2 }
  0x1a   : > { %v385_v24 = vor.u32 %v384_v21, %v381_v20  ;;  %v1594_v31 = vld [vmem:[%s1708_s17] ss:$0 sps:$4 sm:$0x33]   ;;  %v311_v32 = vrot.slane %v309_v27, 5  ;;  %v525_v34 = vshrl.u32 %v1597_v26, 16  ;;  %v528_v39 = vshll.u32 %v1597_v26, 16 }
  0x1b   : > { %238 = vrot.lane.b32.xlu1 %v237_v14, %s1655_s21  ;;  %v314_v33 = vrot.slane %v312_v28, 6  ;;  %v1598_v35 = vld [vmem:[%s1708_s17] ss:$8 sps:$4 sm:$0x18]   ;;  %v1661_v27 = vmov 0  }
  0x1c   : > { %210 = vrot.lane.b32.xlu0 %v209_v15, %s1653_s19  ;;  %v1599_v36 = vld [vmem:[%s1708_s17 + $0x8] ss:$0 sps:$4 sm:$0x33]   ;;  %v527_v41 = vrot.slane %v525_v34, 7  ;;  %v359_v42 = vshrl.u32 %v1598_v35, 16  ;;  %v362_v43 = vshll.u32 %v1598_v35, 16  ;;  %1046 = vmatprep.subr.bf16.mxu0 %v1661_v27 }
  0x1d   : > { %v315_v40 = vor.u32 %v314_v33, %v311_v32  ;;  %v1601_v44 = vld [vmem:[%s1708_s17] ss:$8 sps:$4 sm:$0x18]   ;;  %v562_v45 = vshrl.u32 %v1599_v36, 16  ;;  %v565_v46 = vshll.u32 %v1599_v36, 16  ;;  %1534 = vmatprep.subr.bf16.mxu1 %v1661_v27  ;;  %1583 = vset.pattern.permute.xlu1 %v1661_v27 }
  0x1e   : > { %v530_v47 = vor.u32 %v528_v39, %v527_v41  ;;  %v361_v48 = vrot.slane %v359_v42, 2  ;;  %v364_v49 = vrot.slane %v362_v43, 3  ;;  %v402_v53 = vshrl.u32 %v1601_v44, 16  ;;  %v1600_v55 = vld [vmem:[%s1708_s17] ss:$0 sps:$4 sm:$0x66]   ;;  %1584 = vset.pattern.permute.xlu0 %v1661_v27 }
  0x1f   : > { %339 = vrot.lane.b32.xlu1 %v332_v22, %s1653_s19  ;;  %v564_v51 = vrot.slane %v562_v45, 4  ;;  %v567_v52 = vrot.slane %v565_v46, 5  ;;  %v405_v56 = vshll.u32 %v1601_v44, 16  ;;  %v1742_v59 = vld [vmem:[%s1708_s17 + $0x8] ss:$0 sps:$4 sm:$0x33]  }
  0x20   : > { %386 = vrot.lane.b32.xlu0 %v385_v24, %s1655_s21  ;;  %v365_v54 = vor.u32 %v364_v49, %v361_v48  ;;  %v404_v58 = vrot.slane %v402_v53, 7  ;;  %v433_v60 = vrot.slane %v1600_v55, 3  ;;  %v1602_v61 = vld [vmem:[%s1708_s17] ss:$0 sps:$4 sm:$0x33]   ;;  %v601_v63 = vshrl.u32 %v1742_v59, 16 }
  0x21   : > { %v568_v57 = vor.u32 %v567_v52, %v564_v51  ;;  %v1606_v0 = vld [vmem:[%s1708_s17] ss:$8 sps:$4 sm:$0x18]   ;;  %v643_v1 = vrot.slane %v1602_v61, 6  ;;  %v604_v29 = vshll.u32 %v1742_v59, 16 }
  0x22   : > { %v407_v62 = vor.u32 %v405_v56, %v404_v58  ;;  %v1605_v2 = vld [vmem:[%s1708_s17] ss:$0 sps:$4 sm:$0x33]   ;;  %v1752_v3 = vrot.slane %v601_v63, 1  ;;  %v503_v4 = vshll.u32 %v1606_v0, 16  ;;  %v506_v19 = vshrl.u32 %v1606_v0, 16 }
  0x23   : > { %467 = vrot.lane.b32.xlu1 %v466_v30, %s1656_s22  ;;  %v1610_v5 = vld [vmem:[%s1708_s17] ss:$8 sps:$4 sm:$0x18]   ;;  %v1604_v7 = vld [vmem:[%s1708_s17] ss:$0 sps:$4 sm:$0x66]  }
  0x24   : > { %446 = vrot.lane.b32.xlu0 %v1594_v31, %s1657_s23  ;;  %v1611_v6 = vld [vmem:[%s1708_s17 + $0x8] ss:$0 sps:$4 sm:$0x33]   ;;  %v665_v8 = vrot.slane %v1605_v2, 3  ;;  %v505_v11 = vrot.slane %v503_v4, 4  ;;  %v547_v12 = vshll.u32 %v1610_v5, 16 }
  0x25   : > { %v1607_v9 = vld [vmem:[%s1708_s17] ss:$0 sps:$4 sm:$0x66]   ;;  %v740_v13 = vshrl.u32 %v1611_v6, 16  ;;  %v743_v14 = vshll.u32 %v1611_v6, 16  ;;  %v545_v18 = vshrl.u32 %v1610_v5, 16 }
  0x26   : > { %v1608_v10 = vld [vmem:[%s1708_s17] ss:$0 sps:$4 sm:$0x33]   ;;  %v1612_v15 = vld [vmem:[%s1708_s17] ss:$8 sps:$4 sm:$0x18]  }
  0x27   : > { %316 = vrot.lane.b32.xlu1 %v315_v40, %s1653_s19  ;;  %v477_v16 = vrot.slane %v1607_v9, 5  ;;  %v707_v17 = vrot.slane %v1608_v10, 5  ;;  %v1609_v20 = vld [vmem:[%s1708_s17] ss:$0 sps:$4 sm:$0x33]   ;;  %v549_v21 = vrot.slane %v547_v12, 1 }
  0x28   : > { %489 = vrot.lane.b32.xlu0 %v488_v38, %s1658_s24  ;;  %v1613_v22 = vld [vmem:[%s1708_s17 + $0x8] ss:$0 sps:$4 sm:$0x33]   ;;  %v742_v23 = vrot.slane %v740_v13, 2  ;;  %v745_v24 = vrot.slane %v743_v14, 3  ;;  %v583_v25 = vshrl.u32 %v1612_v15, 16 }
  0x29   : > { %v586_v26 = vshll.u32 %v1612_v15, 16  ;;  %v508_v28 = vrot.slane %v506_v19, 3  ;;  %v783_v30 = vshrl.u32 %v1613_v22, 16  ;;  %v1614_v31 = vld [vmem:[%s1708_s17] ss:$8 sps:$4 sm:$0x18]   ;;  %v550_v32 = vor.u32 %v549_v21, %v545_v18 }
  0x2a   : > { %v1615_v33 = vld [vmem:[%s1708_s17 + $0x8] ss:$0 sps:$4 sm:$0x33]   ;;  %v746_v34 = vor.u32 %v745_v24, %v742_v23  ;;  %v585_v35 = vrot.slane %v583_v25, 5  ;;  %v786_v38 = vshll.u32 %v1613_v22, 16  ;;  %v626_v39 = vshrl.u32 %v1614_v31, 16 }
  0x2b   : > { %531 = vrot.lane.b32.xlu1 %v530_v47, %s1654_s20  ;;  %v588_v36 = vrot.slane %v586_v26, 6  ;;  %v785_v37 = vrot.slane %v783_v30, 7  ;;  %v509_v40 = vor.u32 %v508_v28, %v505_v11  ;;  %v629_v41 = vshll.u32 %v1614_v31, 16  ;;  %v1616_v52 = vld [vmem:[%s1708_s17] ss:$0 sps:$4 sm:$0x66]  }
  0x2c   : > { %337 = vrot.lane.b32.xlu0 %v336_v50, %s1653_s19  ;;  %v820_v42 = vshrl.u32 %v1615_v33, 16  ;;  %v606_v44 = vrot.slane %v604_v29, 2  ;;  %v823_v45 = vshll.u32 %v1615_v33, 16  ;;  %v628_v47 = vrot.slane %v626_v39, 2  ;;  %v182_v56 = vld [vmem:[#allocation2] sm:$0x3] }
  0x2d   : > { %v589_v43 = vor.u32 %v588_v36, %v585_v35  ;;  %v788_v46 = vor.u32 %v786_v38, %v785_v37  ;;  %v631_v48 = vrot.slane %v629_v41, 3  ;;  %v178_v58 = vld [vmem:[%s1708_s17] sm:$0x3]  ;;  %v676_v61 = vrot.slane %v1616_v52, 3  ;;  %v298_v9 = vld [vmem:[#allocation2 + $0x8] sm:$0x30] }
  0x2e   : > { %v822_v49 = vrot.slane %v820_v42, 4  ;;  %v607_v50 = vor.u32 %v606_v44, %v1752_v3  ;;  %v825_v51 = vrot.slane %v823_v45, 5  ;;  %v183_v59 = vsel %vm1787_vm5, %v178_v58, %v182_v56  ;;  %v1619_v2 = vld [vmem:[%s1708_s17] ss:$0 sps:$4 sm:$0x33]   ;;  %v950_v52 = vld [vmem:[%s2305_s2 + $0x8] sm:$0xff] }
  0x2f   : > { %366 = vrot.lane.b32.xlu1 %v365_v54, %s1655_s21  ;;  %v632_v53 = vor.u32 %v631_v48, %v628_v47  ;;  %v1617_v54 = vld [vmem:[%s1708_s17] ss:$0 sps:$4 sm:$0x66]   ;;  %184 = vst [vmem:[#allocation2] sm:$0x3] %v183_v59  ;;  %v2325_v12 = vmov 0 }
  0x30   : > { %569 = vrot.lane.b32.xlu0 %v568_v57, %s1657_s23  ;;  %v826_v57 = vor.u32 %v825_v51, %v822_v49  ;;  %v654_v63 = vrot.slane %v1617_v54, 6  ;;  %v1621_v6 = vld [vmem:[%s1708_s17] ss:$0 sps:$4 sm:$0x33]   ;;  %v2326_v12 = vsel %vm1812_vm10, 4294967295, %v2325_v12  ;;  %v858_v15 = vrot.slane %v1619_v2, 1 }
  0x31   : > { %v185_v14 = vld [vmem:[%s1708_s17] sm:$0x6]  ;;  %v1625_v18 = vld [vmem:[%s1708_s17] ss:$8 sps:$4 sm:$0x18]   ;;  %v903_v26 = vrot.slane %v1621_v6, 3 }
  0x32   : > { %v1620_v22 = vld [vmem:[%s1708_s17] ss:$0 sps:$4 sm:$0x66]   ;;  %v805_v30 = vshll.u32 %v1625_v18, 16  ;;  %v803_v35 = vshrl.u32 %v1625_v18, 16  ;;  %v955_v58 = vld [vmem:[%s2305_s2 + $0x30] sm:$0xff] }
  0x33   : > { %434 = vrot.lane.b32.xlu1 %v433_v60, %s1654_s20  ;;  %v1631_v60 = vld [vmem:[%s1708_s17 + $0x8] ss:$0 sps:$4 sm:$0x33]   ;;  %v1626_v39 = vld [vmem:[%s1708_s17] ss:$0 sps:$4 sm:$0x66]  }
  0x34   : > { %408 = vrot.lane.b32.xlu0 %v407_v62, %s1652_s18  ;;  %v1618_v62 = vld [vmem:[%s1708_s17] ss:$0 sps:$4 sm:$0x33]   ;;  %v288_v0 = vshrl.u32 %v1631_v60, 16  ;;  %v807_v36 = vrot.slane %v805_v30, 1  ;;  %v870_v42 = vrot.slane %v1626_v39, 1 }
  0x35   : > { %v881_v10 = vrot.slane %v1618_v62, 6  ;;  %v1628_v45 = vld [vmem:[%s1708_s17] ss:$0 sps:$4 sm:$0x66]   ;;  %v1634_v49 = vld [vmem:[%s2304_s1 + $0x4] ss:$8 sps:$4 sm:$0xff]  }
  0x36   : > { %v290_v4 = vrot.slane %v288_v0, 4  ;;  %v892_v47 = vrot.slane %v1628_v45, 6  ;;  %v1629_v48 = vld [vmem:[%s1708_s17] ss:$0 sps:$4 sm:$0x33]   ;;  %1510 = vmatprep.mubr.msk.bf16.mxu0 %vm2307_vm11, %v1634_v49  ;;  %v2327_v59 = vmov 0 }
  0x37   : > { %644 = vrot.lane.b32.xlu1 %v643_v1, %s1659_s25  ;;  %v291_v1 = vshll.u32 %v1631_v60, 16  ;;  %v949_v51 = vld [vmem:[%s2305_s2] sm:$0xff]  ;;  %v2328_v59 = vsel %vm1864_vm15, 4294967295, %v2327_v59  ;;  %v259_v60 = vld [vmem:[#allocation2 + $0x8] sm:$0x6]  ;;  %v2346_v45 = vmov 0 }
  0x38   : > { %610 = vrot.lane.b32.xlu0 %v1752_v3, %s1656_s22  ;;  %v1623_v3 = vld [vmem:[%s1708_s17] ss:$8 sps:$4 sm:$0x18]   ;;  %v426_v6 = vld [vmem:[#allocation2 + $0x10] sm:$0x60]  ;;  %s1525_s19 = sshll.u32 %s2368_s13, 5 }
  0x39   : > { %v293_v5 = vrot.slane %v291_v1, 5  ;;  %v953_v54 = vld [vmem:[%s2305_s2 + $0x20] sm:$0xff]  ;;  %v954_v1 = vld [vmem:[%s2305_s2 + $0x28] sm:$0xff]  ;;  %s1668_s13 = smov 122  }
  0x3a   : > { %v1630_v56 = vld [vmem:[%s1708_s17] ss:$8 sps:$4 sm:$0x18]  }
  0x3b   : > { %456 = vrot.lane.b32.xlu1 %v1604_v7, %s1657_s23  ;;  %v1622_v7 = vld [vmem:[%s1708_s17] ss:$8 sps:$4 sm:$0x18]   ;;  %v294_v13 = vor.u32 %v293_v5, %v290_v4  ;;  %v2331_v5 = vmov 0 }
  0x3c   : > { %666 = vrot.lane.b32.xlu0 %v665_v8, %s1660_s26  ;;  %v761_v23 = vshll.u32 %v1622_v7, 16  ;;  %v764_v37 = vshrl.u32 %v1622_v7, 16  ;;  %v2332_v5 = vsel %vm1881_vm7, 4294967295, %v2331_v5  ;;  %v270_v7 = vshrl.u32 %v1630_v56, 16  ;;  %v1632_v55 = vld [vmem:[%s2304_s1] ss:$8 sps:$4 sm:$0xff]  }
  0x3d   : > { %v299_v19 = vsel %vm1804_vm9, %v294_v13, %v298_v9 }
  0x3e   : > { %300 = vst [vmem:[#allocation2 + $0x8] sm:$0x30] %v299_v19  ;;  %v763_v31 = vrot.slane %v761_v23, 4  ;;  %v766_v41 = vrot.slane %v764_v37, 3 }
  0x3f   : > { %510 = vrot.lane.b32.xlu1 %v505_v11, %s1654_s20  ;;  %v1624_v11 = vld [vmem:[%s1708_s17] ss:$8 sps:$4 sm:$0x18]  }
  0x40   : > { %478 = vrot.lane.b32.xlu0 %v477_v16, %s1656_s22  ;;  %v722_v16 = vshrl.u32 %v1623_v3, 16  ;;  %v841_v24 = vshrl.u32 %v1624_v11, 16  ;;  %v844_v25 = vshll.u32 %v1624_v11, 16  ;;  %v767_v44 = vor.u32 %v766_v41, %v763_v31  ;;  %v230_v11 = vld [vmem:[#allocation2] sm:$0xc0] }
  0x42   : > { %v724_v28 = vrot.slane %v722_v16, 6  ;;  %v846_v33 = vrot.slane %v844_v25, 6 }
  0x43   : > { %708 = vrot.lane.b32.xlu1 %v707_v17, %s1662_s27  ;;  %v725_v17 = vshll.u32 %v1623_v3, 16 }
  0x44   : > { %687 = vrot.lane.b32.xlu0 %v1609_v20, %s1663_s28  ;;  %v188_v20 = vld [vmem:[#allocation2] sm:$0x6] }
  0x45   : > { %v189_v21 = vsel %vm1812_vm10, %v185_v14, %v188_v20  ;;  %v727_v29 = vrot.slane %v725_v17, 7  ;;  %v956_v14 = vld [vmem:[%s2305_s2 + $0x38] sm:$0xff]  ;;  %vm242_vm10 = vsmask.f32 7966 }
  0x46   : > { %190 = vst [vmem:[#allocation2] sm:$0x6] %v189_v21 }
  0x47   : > { %551 = vrot.lane.b32.xlu1 %v550_v32, %s1657_s23  ;;  %v843_v32 = vrot.slane %v841_v24, 5 }
  0x48   : > { %747 = vrot.lane.b32.xlu0 %v746_v34, %s1659_s25  ;;  %v728_v34 = vor.u32 %v727_v29, %v724_v28 }
  0x49   : > { %v847_v38 = vor.u32 %v846_v33, %v843_v32 }
  0x4b   : > { %512 = vrot.lane.b32.xlu1 %v509_v40, %s1654_s20  ;;  %v808_v40 = vor.u32 %v807_v36, %v803_v35 }
  0x4c   : > { %590 = vrot.lane.b32.xlu0 %v589_v43, %s1656_s22  ;;  %v1627_v43 = vld [vmem:[%s1708_s17] ss:$0 sps:$4 sm:$0x66]   ;;  %s1672_s17 = smov 107  }
  0x4f   : > { %789 = vrot.lane.b32.xlu1 %v788_v46, %s1660_s26  ;;  %v914_v46 = vrot.slane %v1627_v43, 3 }
  0x50   : > { %608 = vrot.lane.b32.xlu0 %v607_v50, %s1656_s22  ;;  %v1637_v50 = vld [vmem:[%s2304_s1 + $0x24] ss:$8 sps:$4 sm:$0xff]   ;;  %s2074_s22 = scalar_lea.vmem %s2306_s3, %s1525_s19 }
  0x51   : > { %1512 = vmatprep.mubr.msk.bf16.mxu1 %vm2307_vm11, %v1637_v50  ;;  %vm278_vm11 = vsmask.f32 7946 }
  0x52   : > { %vm1898_vm4 = vmand %vm277_vm14, %vm278_vm11  ;;  %vm369_vm14 = vsmask.f32 7938 }
  0x53   : > { %633 = vrot.lane.b32.xlu1 %v632_v53, %s1658_s24  ;;  %v951_v53 = vld [vmem:[%s2305_s2 + $0x10] sm:$0xff]  ;;  %vm1909_vm11 = vmand %vm2316_vm6, %vm346_vm13  ;;  %vm2345_vm13 = vcmask 718853   ;;  %s1669_s24 = smov 119  }
  0x54   : > { %827 = vrot.lane.b32.xlu0 %v826_v57, %s1663_s28  ;;  %v952_v57 = vld [vmem:[%s2305_s2 + $0x18] sm:$0xff] }
  0x57   : > { %677 = vrot.lane.b32.xlu1 %v676_v61, %s1660_s26  ;;  %v272_v61 = vshll.u32 %v1630_v56, 16 }
  0x58   : > { %655 = vrot.lane.b32.xlu0 %v654_v63, %s1659_s25  ;;  %v202_v63 = vld [vmem:[#allocation2] sm:$0x18] }
  0x59   : > { %v274_v9 = vrot.slane %v272_v61, 1 }
  0x5b   : > { %882 = vrot.lane.b32.xlu1 %v881_v10, %s1664_s29  ;;  %v275_v18 = vor.u32 %v274_v9, %v270_v7 }
  0x5c   : > { %859 = vrot.lane.b32.xlu0 %v858_v15, %s1665_s30 }
  0x5f   : > { %697 = vrot.lane.b32.xlu1 %v1620_v22, %s1663_s28 }
  0x60   : > { %904 = vrot.lane.b32.xlu0 %v903_v26, %s1666_s4  ;;  %v348_v26 = vld [vmem:[#allocation2 + $0x10] sm:$0x1] }
  0x63   : > { %768 = vrot.lane.b32.xlu1 %v763_v31, %s1660_s26  ;;  %v391_v31 = vld [vmem:[#allocation2 + $0x10] sm:$0xc] }
  0x64   : > { %729 = vrot.lane.b32.xlu0 %v728_v34, %s1659_s25  ;;  %s1670_s25 = smov 113  }
  0x67   : > { %848 = vrot.lane.b32.xlu1 %v847_v38, %s1662_s27  ;;  %v470_v38 = vld [vmem:[#allocation2 + $0x18] sm:$0x18] }
  0x68   : > { %809 = vrot.lane.b32.xlu0 %v808_v40, %s1663_s28  ;;  %v449_v40 = vld [vmem:[#allocation2 + $0x18] sm:$0x3] }
  0x6b   : > { %871 = vrot.lane.b32.xlu1 %v870_v42, %s1665_s30 }
  0x6c   : > { %770 = vrot.lane.b32.xlu0 %v767_v44, %s1660_s26  ;;  %s1671_s26 = smov 110  }
  0x6f   : > { %915 = vrot.lane.b32.xlu1 %v914_v46, %s1666_s4  ;;  %v322_v46 = vld [vmem:[#allocation2 + $0x8] sm:$0x60] }
  0x70   : > { %893 = vrot.lane.b32.xlu0 %v892_v47, %s1664_s29  ;;  %v492_v47 = vld [vmem:[#allocation2 + $0x18] sm:$0xc0] }
  0x73   : > { %959 = vperm.xlu1 %1583, %v949_v51  }
  0x74   : > { %925 = vrot.lane.b32.xlu0 %v1629_v48, %s1667_s9 }
  0x77   : > { %969 = vperm.xlu1 %1583, %v951_v53  }
  0x78   : > { %964 = vperm.xlu0 %1584, %v950_v52   ;;  %v534_v52 = vld [vmem:[#allocation2 + $0x20] sm:$0x6] }
  0x7b   : > { %974 = vperm.xlu1 %1583, %v952_v57  }
  0x7c   : > { %979 = vperm.xlu0 %1584, %v953_v54  }
  0x7f   : > { %984 = vperm.xlu1 %1583, %v954_v1  }
  0x80   : > { %989 = vperm.xlu0 %1584, %v955_v58  }
  0x83   : > { %994 = vperm.xlu1 %1583, %v956_v14  }
  0x85   : > { %v255_v0 = vpop.permute.xlu1 %254 }
  0x86   : > { %v260_v2 = vsel %vm1864_vm15, %v255_v0, %v259_v60  ;;  %v197_v3 = vpop.permute.xlu0 %196  ;;  %v572_v60 = vld [vmem:[#allocation2 + $0x20] sm:$0x30] }
  0x87   : > { %261 = vst [vmem:[#allocation2 + $0x8] sm:$0x6] %v260_v2  ;;  %v203_v4 = vsel %vm1869_vm0, %v197_v3, %v202_v63 }
  0x88   : > { %204 = vst [vmem:[#allocation2] sm:$0x18] %v203_v4 }
  0x89   : > { %v422_v13 = vpop.permute.xlu1 %421 }
  0x8a   : > { %v427_v15 = vsel %vm1881_vm7, %v422_v13, %v426_v6  ;;  %v225_v16 = vpop.permute.xlu0 %224  ;;  %vm2320_vm7 = vcmask 719879  }
  0x8b   : > { %428 = vst [vmem:[#allocation2 + $0x10] sm:$0x60] %v427_v15  ;;  %v231_v17 = vsel %vm1886_vm12, %v225_v16, %v230_v11  ;;  %vm1923_vm2 = vmand %vm2320_vm7, %vm242_vm10  ;;  %vm320_vm10 = vsmask.f32 7958  ;;  %v647_v16 = vld [vmem:[#allocation2 + $0x28] sm:$0xc] }
  0x8c   : > { %232 = vst [vmem:[#allocation2] sm:$0xc0] %v231_v17  ;;  %vm1938_vm1 = vmand %vm2345_vm13, %vm320_vm10  ;;  %vm2348_vm10 = vcmask 713728   ;;  %v615_v17 = vld [vmem:[#allocation2 + $0x28] sm:$0x1] }
  0x8d   : > { %v239_v20 = vpop.permute.xlu1 %238  ;;  %v2347_v45 = vsel %vm1938_vm1, 4294967295, %v2346_v45  ;;  %vm1952_vm13 = vmand %vm2348_vm10, %vm369_vm14  ;;  %vm2354_vm14 = vcmask 716803  }
  0x8e   : > { %248 = vst.msk [vmem:[#allocation2 + $0x8] sm:$0x1] %vm2316_vm6, %v239_v20  ;;  %v211_v22 = vpop.permute.xlu0 %210  ;;  %v280_v23 = vld [vmem:[#allocation2 + $0x8] sm:$0xc]  ;;  %vm437_vm6 = vsmask.f32 7962 }
  0x8f   : > { %v216_v24 = vld [vmem:[#allocation2] sm:$0x30]  ;;  %v281_v28 = vsel %vm1898_vm4, %v275_v18, %v280_v23 }
  0x90   : > { %v217_v29 = vsel %vm1903_vm3, %v211_v22, %v216_v24  ;;  %282 = vst [vmem:[#allocation2 + $0x8] sm:$0xc] %v281_v28  ;;  %v669_v24 = vld [vmem:[#allocation2 + $0x28] sm:$0x60] }
  0x91   : > { %218 = vst [vmem:[#allocation2] sm:$0x30] %v217_v29  ;;  %v340_v33 = vpop.permute.xlu1 %339 }
  0x92   : > { %v349_v34 = vsel %vm1909_vm11, %v340_v33, %v348_v26  ;;  %v387_v35 = vpop.permute.xlu0 %386  ;;  %v439_v6 = vld [vmem:[#allocation2 + $0x10] sm:$0xc0] }
  0x93   : > { %v244_v36 = vld [vmem:[#allocation2] sm:$0x80]  ;;  %350 = vst [vmem:[#allocation2 + $0x10] sm:$0x1] %v349_v34  ;;  %v392_v37 = vsel %vm1918_vm8, %v387_v35, %v391_v31 }
  0x94   : > { %v245_v39 = vsel %vm1923_vm2, %v239_v20, %v244_v36  ;;  %393 = vst [vmem:[#allocation2 + $0x10] sm:$0xc] %v392_v37 }
  0x95   : > { %246 = vst [vmem:[#allocation2] sm:$0x80] %v245_v39  ;;  %v468_v41 = vpop.permute.xlu1 %467 }
  0x96   : > { %v471_v42 = vsel %vm1869_vm0, %v468_v41, %v470_v38  ;;  %v447_v43 = vpop.permute.xlu0 %446  ;;  %v711_v41 = vld [vmem:[#allocation2 + $0x30] sm:$0x18] }
  0x97   : > { %472 = vst [vmem:[#allocation2 + $0x18] sm:$0x18] %v471_v42  ;;  %v450_v44 = vsel %vm1787_vm5, %v447_v43, %v449_v40  ;;  %v690_v42 = vld [vmem:[#allocation2 + $0x30] sm:$0x3] }
  0x98   : > { %451 = vst [vmem:[#allocation2 + $0x18] sm:$0x3] %v450_v44 }
  0x99   : > { %v317_v48 = vpop.permute.xlu1 %316 }
  0x9a   : > { %v323_v49 = vsel %vm1938_vm1, %v317_v48, %v322_v46  ;;  %v490_v50 = vpop.permute.xlu0 %489  ;;  %v371_v61 = vld [vmem:[#allocation2 + $0x10] sm:$0x3]  ;;  %vm411_vm1 = vsmask.f32 7950  ;;  %v750_v48 = vld [vmem:[#allocation2 + $0x30] sm:$0xc0] }
  0x9b   : > { %324 = vst [vmem:[#allocation2 + $0x8] sm:$0x60] %v323_v49  ;;  %v493_v51 = vsel %vm1886_vm12, %v490_v50, %v492_v47  ;;  %vm1966_vm10 = vmand %vm2354_vm14, %vm411_vm1  ;;  %v413_v11 = vld [vmem:[#allocation2 + $0x10] sm:$0x18]  ;;  %vm2360_vm1 = vnez %v2347_v45  ;;  %vm2362_vm14 = vcmask 719879  }
  0x9c   : > { %494 = vst [vmem:[#allocation2 + $0x18] sm:$0xc0] %v493_v51  ;;  %v939_v53 = vld [vmem:[#allocation2] sm:$0xff] }
  0x9d   : > { %1047 = vmatpush1.bf16.msra.mxu0 %v939_v53  ;;  %1544 = vmatpush1.bf16.msra.mxu1 %v939_v53  ;;  %v532_v54 = vpop.permute.xlu1 %531 }
  0x9e   : > { %v535_v56 = vsel %vm1864_vm15, %v532_v54, %v534_v52  ;;  %v338_v57 = vpop.permute.xlu0 %337  ;;  %1048 = vmatprep.subr.bf16.mxu0 %v1661_v27  ;;  %1535 = vmatprep.subr.bf16.mxu1 %v1661_v27  ;;  %vm2351_vm15 = vcmask 719878   ;;  %v481_v38 = vld [vmem:[#allocation2 + $0x18] sm:$0x30] }
  0x9f   : > { %536 = vst [vmem:[#allocation2 + $0x20] sm:$0x6] %v535_v56  ;;  %344 = vst.msk [vmem:[#allocation2 + $0x8] sm:$0x80] %vm2320_vm7, %v338_v57  ;;  %v459_v28 = vld [vmem:[#allocation2 + $0x18] sm:$0x6] }
  0xa0   : > { %vm1961_vm7 = vmand %vm2351_vm15, %vm437_vm6  ;;  %vm2357_vm15 = vnez %v2326_v12  ;;  %vm2358_vm6 = vnez %v2332_v5 }
  0xa1   : > { %v367_v63 = vpop.permute.xlu1 %366 }
  0xa2   : > { %v372_v0 = vsel %vm1952_vm13, %v367_v63, %v371_v61  ;;  %v570_v1 = vpop.permute.xlu0 %569  ;;  %v792_v61 = vld [vmem:[#allocation2 + $0x38] sm:$0x6] }
  0xa3   : > { %373 = vst [vmem:[#allocation2 + $0x10] sm:$0x3] %v372_v0  ;;  %v573_v2 = vsel %vm1804_vm9, %v570_v1, %v572_v60  ;;  %v516_v36 = vld [vmem:[#allocation2 + $0x18] sm:$0x80]  ;;  %v830_v1 = vld [vmem:[#allocation2 + $0x38] sm:$0x30] }
  0xa4   : > { %574 = vst [vmem:[#allocation2 + $0x20] sm:$0x30] %v573_v2 }
  0xa5   : > { %v435_v7 = vpop.permute.xlu1 %434 }
  0xa6   : > { %v440_v9 = vsel %vm1961_vm7, %v435_v7, %v439_v6  ;;  %v409_v13 = vpop.permute.xlu0 %408  ;;  %v940_v14 = vld [vmem:[#allocation2 + $0x8] sm:$0xff]  ;;  %v554_v49 = vld [vmem:[#allocation2 + $0x20] sm:$0xc] }
  0xa7   : > { %441 = vst [vmem:[#allocation2 + $0x10] sm:$0xc0] %v440_v9  ;;  %v414_v15 = vsel %vm1966_vm10, %v409_v13, %v413_v11  ;;  %1049 = vmatpush1.bf16.msra.mxu0 %v940_v14  ;;  %1545 = vmatpush1.bf16.msra.mxu1 %v940_v14 }
  0xa8   : > { %415 = vst [vmem:[#allocation2 + $0x10] sm:$0x18] %v414_v15  ;;  %1050 = vmatprep.subr.bf16.mxu0 %v1661_v27  ;;  %1536 = vmatprep.subr.bf16.mxu1 %v1661_v27 }
  0xa9   : > { %v645_v18 = vpop.permute.xlu1 %644 }
  0xaa   : > { %v648_v20 = vsel %vm1918_vm8, %v645_v18, %v647_v16  ;;  %v611_v22 = vpop.permute.xlu0 %610 }
  0xab   : > { %649 = vst [vmem:[#allocation2 + $0x28] sm:$0xc] %v648_v20  ;;  %v616_v23 = vsel %vm1909_vm11, %v611_v22, %v615_v17  ;;  %v593_v56 = vld [vmem:[#allocation2 + $0x20] sm:$0x60]  ;;  %v885_v20 = vld [vmem:[#allocation2 + $0x40] sm:$0xc] }
  0xac   : > { %617 = vst [vmem:[#allocation2 + $0x28] sm:$0x1] %v616_v23  ;;  %v863_v22 = vld [vmem:[#allocation2 + $0x40] sm:$0x1] }
  0xad   : > { %v457_v26 = vpop.permute.xlu1 %456 }
  0xae   : > { %v460_v29 = vsel %vm2357_vm15, %v457_v26, %v459_v28  ;;  %v667_v31 = vpop.permute.xlu0 %666  ;;  %v907_v28 = vld [vmem:[#allocation2 + $0x40] sm:$0x60] }
  0xaf   : > { %461 = vst [vmem:[#allocation2 + $0x18] sm:$0x6] %v460_v29  ;;  %v670_v33 = vsel %vm2358_vm6, %v667_v31, %v669_v24  ;;  %v941_v34 = vld [vmem:[#allocation2 + $0x10] sm:$0xff] }
  0xb0   : > { %671 = vst [vmem:[#allocation2 + $0x28] sm:$0x60] %v670_v33  ;;  %1051 = vmatpush1.bf16.msra.mxu0 %v941_v34  ;;  %1546 = vmatpush1.bf16.msra.mxu1 %v941_v34 }
  0xb1   : > { %v511_v35 = vpop.permute.xlu1 %510  ;;  %1052 = vmatprep.subr.bf16.mxu0 %v1661_v27  ;;  %1537 = vmatprep.subr.bf16.mxu1 %v1661_v27 }
  0xb2   : > { %v517_v37 = vsel %vm1923_vm2, %v511_v35, %v516_v36  ;;  %v479_v39 = vpop.permute.xlu0 %478  ;;  %v658_v15 = vld [vmem:[#allocation2 + $0x28] sm:$0x18] }
  0xb3   : > { %518 = vst [vmem:[#allocation2 + $0x18] sm:$0x80] %v517_v37  ;;  %v482_v40 = vsel %vm1903_vm3, %v479_v39, %v481_v38  ;;  %v636_v6 = vld [vmem:[#allocation2 + $0x28] sm:$0x3] }
  0xb4   : > { %483 = vst [vmem:[#allocation2 + $0x18] sm:$0x30] %v482_v40 }
  0xb5   : > { %v709_v43 = vpop.permute.xlu1 %708 }
  0xb6   : > { %v712_v44 = vsel %vm1869_vm0, %v709_v43, %v711_v41  ;;  %v688_v46 = vpop.permute.xlu0 %687  ;;  %vm2359_vm0 = vcmask 712704  }
  0xb7   : > { %713 = vst [vmem:[#allocation2 + $0x30] sm:$0x18] %v712_v44  ;;  %v691_v47 = vsel %vm1787_vm5, %v688_v46, %v690_v42  ;;  %v680_v14 = vld [vmem:[#allocation2 + $0x28] sm:$0xc0] }
  0xb8   : > { %692 = vst [vmem:[#allocation2 + $0x30] sm:$0x3] %v691_v47 }
  0xb9   : > { %v552_v50 = vpop.permute.xlu1 %551 }
  0xba   : > { %v555_v51 = vsel %vm1898_vm4, %v552_v50, %v554_v49  ;;  %v748_v52 = vpop.permute.xlu0 %747 }
  0xbb   : > { %556 = vst [vmem:[#allocation2 + $0x20] sm:$0xc] %v555_v51  ;;  %v751_v53 = vsel %vm1886_vm12, %v748_v52, %v750_v48  ;;  %v942_v54 = vld [vmem:[#allocation2 + $0x18] sm:$0xff]  ;;  %vm2361_vm12 = vnez %v2328_v59  ;;  %v928_v52 = vld [vmem:[#allocation2 + $0x48] sm:$0x3] }
  0xbc   : > { %752 = vst [vmem:[#allocation2 + $0x30] sm:$0xc0] %v751_v53  ;;  %1053 = vmatpush1.bf16.msra.mxu0 %v942_v54  ;;  %1547 = vmatpush1.bf16.msra.mxu1 %v942_v54 }
  0xbd   : > { %v513_v62 = vpop.permute.xlu1 %512  ;;  %1054 = vmatprep.subr.bf16.mxu0 %v1661_v27  ;;  %1538 = vmatprep.subr.bf16.mxu1 %v1661_v27 }
  0xbe   : > { %519 = vst.msk [vmem:[#allocation2 + $0x20] sm:$0x1] %vm2359_vm0, %v513_v62  ;;  %v591_v57 = vpop.permute.xlu0 %590  ;;  %v732_v12 = vld [vmem:[#allocation2 + $0x30] sm:$0x30] }
  0xbf   : > { %v594_v60 = vsel %vm2360_vm1, %v591_v57, %v593_v56  ;;  %v700_v31 = vld [vmem:[#allocation2 + $0x30] sm:$0x6]  ;;  %v1635_v56 = vld [vmem:[%s2304_s1 + $0x20] ss:$8 sps:$4 sm:$0xff]   ;;  %v1638_v57 = vld [vmem:[%s2304_s1 + $0x14] ss:$8 sps:$4 sm:$0xff]  }
  0xc0   : > { %595 = vst [vmem:[#allocation2 + $0x20] sm:$0x60] %v594_v60  ;;  %v1640_v60 = vld [vmem:[%s2304_s1 + $0x34] ss:$8 sps:$4 sm:$0xff]  }
  0xc1   : > { %v790_v10 = vpop.permute.xlu1 %789 }
  0xc2   : > { %v793_v63 = vsel %vm2361_vm12, %v790_v10, %v792_v61  ;;  %v609_v0 = vpop.permute.xlu0 %608  ;;  %v1643_v61 = vld [vmem:[%s2304_s1 + $0x30] ss:$8 sps:$4 sm:$0xff]  }
  0xc3   : > { %794 = vst [vmem:[#allocation2 + $0x38] sm:$0x6] %v793_v63  ;;  %614 = vst.msk [vmem:[#allocation2 + $0x20] sm:$0x80] %vm2362_vm14, %v609_v0  ;;  %v774_v37 = vld [vmem:[#allocation2 + $0x30] sm:$0x80] }
  0xc5   : > { %v634_v2 = vpop.permute.xlu1 %633 }
  0xc6   : > { %v637_v7 = vsel %vm1952_vm13, %v634_v2, %v636_v6  ;;  %v828_v9 = vpop.permute.xlu0 %827 }
  0xc7   : > { %638 = vst [vmem:[#allocation2 + $0x28] sm:$0x3] %v637_v7  ;;  %v831_v11 = vsel %vm1804_vm9, %v828_v9, %v830_v1  ;;  %vm2363_vm9 = vmmov %vm2362_vm14 }
  0xc8   : > { %832 = vst [vmem:[#allocation2 + $0x38] sm:$0x30] %v831_v11 }
  0xc9   : > { %v678_v13 = vpop.permute.xlu1 %677 }
  0xca   : > { %v681_v59 = vsel %vm1961_vm7, %v678_v13, %v680_v14  ;;  %v656_v16 = vpop.permute.xlu0 %655  ;;  %v943_v17 = vld [vmem:[#allocation2 + $0x20] sm:$0xff]  ;;  %v812_v42 = vld [vmem:[#allocation2 + $0x38] sm:$0xc] }
  0xcb   : > { %682 = vst [vmem:[#allocation2 + $0x28] sm:$0xc0] %v681_v59  ;;  %v659_v18 = vsel %vm1966_vm10, %v656_v16, %v658_v15  ;;  %1055 = vmatpush1.bf16.msra.mxu0 %v943_v17  ;;  %1548 = vmatpush1.bf16.msra.mxu1 %v943_v17 }
  0xcc   : > { %660 = vst [vmem:[#allocation2 + $0x28] sm:$0x18] %v659_v18  ;;  %1056 = vmatprep.subr.bf16.mxu0 %v1661_v27  ;;  %1539 = vmatprep.subr.bf16.mxu1 %v1661_v27 }
  0xcd   : > { %v883_v8 = vpop.permute.xlu1 %882 }
  0xce   : > { %v886_v23 = vsel %vm1918_vm8, %v883_v8, %v885_v20  ;;  %v860_v24 = vpop.permute.xlu0 %859  ;;  %vm1217_vm8 = vcmask 191616  }
  0xcf   : > { %887 = vst [vmem:[#allocation2 + $0x40] sm:$0xc] %v886_v23  ;;  %862 = vst.msk [vmem:[#allocation2 + $0x38] sm:$0x80] %vm2363_vm9, %v860_v24  ;;  %v864_v26 = vsel %vm1909_vm11, %v860_v24, %v863_v22  ;;  %v851_v40 = vld [vmem:[#allocation2 + $0x38] sm:$0x60] }
  0xd0   : > { %865 = vst [vmem:[#allocation2 + $0x40] sm:$0x1] %v864_v26  ;;  %vm1184_vm11 = vcmask 126016  }
  0xd1   : > { %v698_v29 = vpop.permute.xlu1 %697 }
  0xd2   : > { %v701_v33 = vsel %vm2357_vm15, %v698_v29, %v700_v31  ;;  %v905_v34 = vpop.permute.xlu0 %904  ;;  %vm1349_vm15 = vcmask 454016  }
  0xd3   : > { %702 = vst [vmem:[#allocation2 + $0x30] sm:$0x6] %v701_v33  ;;  %v908_v30 = vsel %vm2358_vm6, %v905_v34, %v907_v28  ;;  %v944_v35 = vld [vmem:[#allocation2 + $0x28] sm:$0xff]  ;;  %vm1382_vm6 = vcmask 519616  }
  0xd4   : > { %909 = vst [vmem:[#allocation2 + $0x40] sm:$0x60] %v908_v30  ;;  %1057 = vmatpush1.bf16.msra.mxu0 %v944_v35  ;;  %1549 = vmatpush1.bf16.msra.mxu1 %v944_v35 }
  0xd5   : > { %v769_v36 = vpop.permute.xlu1 %768  ;;  %1058 = vmatprep.subr.bf16.mxu0 %v1661_v27  ;;  %1540 = vmatprep.subr.bf16.mxu1 %v1661_v27 }
  0xd6   : > { %v775_v25 = vsel %vm1923_vm2, %v769_v36, %v774_v37  ;;  %v730_v38 = vpop.permute.xlu0 %729  ;;  %v896_v50 = vld [vmem:[#allocation2 + $0x40] sm:$0x18]  ;;  %vm1250_vm2 = vcmask 257216  }
  0xd7   : > { %776 = vst [vmem:[#allocation2 + $0x30] sm:$0x80] %v775_v25  ;;  %v733_v5 = vsel %vm1903_vm3, %v730_v38, %v732_v12  ;;  %v874_v46 = vld [vmem:[#allocation2 + $0x40] sm:$0x3]  ;;  %vm2364_vm3 = vmmov %vm2359_vm0 }
  0xd8   : > { %734 = vst [vmem:[#allocation2 + $0x30] sm:$0x30] %v733_v5 }
  0xd9   : > { %v849_v39 = vpop.permute.xlu1 %848 }
  0xda   : > { %v852_v41 = vsel %vm2360_vm1, %v849_v39, %v851_v40  ;;  %v810_v43 = vpop.permute.xlu0 %809 }
  0xdb   : > { %853 = vst [vmem:[#allocation2 + $0x38] sm:$0x60] %v852_v41  ;;  %v813_v44 = vsel %vm1898_vm4, %v810_v43, %v812_v42  ;;  %v918_v49 = vld [vmem:[#allocation2 + $0x40] sm:$0xc0] }
  0xdc   : > { %814 = vst [vmem:[#allocation2 + $0x38] sm:$0xc] %v813_v44 }
  0xdd   : > { %v872_v32 = vpop.permute.xlu1 %871 }
  0xde   : > { %v875_v47 = vsel %vm1952_vm13, %v872_v32, %v874_v46  ;;  %v771_v21 = vpop.permute.xlu0 %770  ;;  %vm1283_vm13 = vcmask 322816  }
  0xdf   : > { %876 = vst [vmem:[#allocation2 + $0x40] sm:$0x3] %v875_v47  ;;  %777 = vst.msk [vmem:[#allocation2 + $0x38] sm:$0x1] %vm2364_vm3, %v771_v21  ;;  %v945_v48 = vld [vmem:[#allocation2 + $0x30] sm:$0xff] }
  0xe0   : > { %1059 = vmatpush1.bf16.msra.mxu0 %v945_v48  ;;  %1550 = vmatpush1.bf16.msra.mxu1 %v945_v48 }
  0xe1   : > { %v916_v45 = vpop.permute.xlu1 %915  ;;  %1060 = vmatprep.subr.bf16.mxu0 %v1661_v27  ;;  %1541 = vmatprep.subr.bf16.mxu1 %v1661_v27 }
  0xe2   : > { %v919_v19 = vsel %vm1961_vm7, %v916_v45, %v918_v49  ;;  %v894_v51 = vpop.permute.xlu0 %893  ;;  %vm1151_vm7 = vcmask 60416  }
  0xe3   : > { %920 = vst [vmem:[#allocation2 + $0x40] sm:$0xc0] %v919_v19  ;;  %v897_v58 = vsel %vm1966_vm10, %v894_v51, %v896_v50  ;;  %vm1316_vm10 = vcmask 388416  }
  0xe4   : > { %898 = vst [vmem:[#allocation2 + $0x40] sm:$0x18] %v897_v58 }
  0xe6   : > { %v926_v53 = vpop.permute.xlu0 %925  ;;  %v946_v54 = vld [vmem:[#allocation2 + $0x38] sm:$0xff] }
  0xe7   : > { %v929_v62 = vsel %vm1787_vm5, %v926_v53, %v928_v52  ;;  %1061 = vmatpush1.bf16.msra.mxu0 %v946_v54  ;;  %1551 = vmatpush1.bf16.msra.mxu1 %v946_v54  ;;  %vm2365_vm5 = vcmask 261120  }
  0xe8   : > { %930 = vst [vmem:[#allocation2 + $0x48] sm:$0x3] %v929_v62  ;;  %1062 = vmatprep.subr.bf16.mxu0 %v1661_v27  ;;  %1542 = vmatprep.subr.bf16.mxu1 %v1661_v27  ;;  %vm2366_vm4 = vmmov %vm2365_vm5 }
  0xeb   : > { %v947_v3 = vld [vmem:[#allocation2 + $0x40] sm:$0xff] }
  0xec   : > { %1063 = vmatpush1.bf16.msra.mxu0 %v947_v3  ;;  %1552 = vmatpush1.bf16.msra.mxu1 %v947_v3 }
  0xed   : > { %1064 = vmatprep.subr.bf16.mxu0 %v1661_v27  ;;  %1543 = vmatprep.subr.bf16.mxu1 %v1661_v27  ;;  %v1642_v27 = vld [vmem:[%s2304_s1 + $0x10] ss:$8 sps:$4 sm:$0xff]  }
  0xef   : > { %v948_v4 = vld [vmem:[#allocation2 + $0x48] sm:$0xff] }
  0xf0   : > { %1065 = vmatpush1.bf16.msra.mxu0 %v948_v4  ;;  %1553 = vmatpush1.bf16.msra.mxu1 %v948_v4 }
  0xf2   : > { %v960_v10 = vpop.permute.xlu1 %959 }
  0xf3   : > { %1079 = vmatmul.mubr.bf16.vlgmr.msra.gmra.mrb[0].mxu0 %v1632_v55  ;;  %1095 = vmatmul.mubr.bf16.vlgmr.msra.gmra.mrb[0].mxu1 %v1635_v56 }
  0xf4   : > { %1511 = vmatprep.mubr.msk.bf16.mxu0 %vm2365_vm5, %v1638_v57  ;;  %1513 = vmatprep.mubr.msk.bf16.mxu1 %vm2366_vm4, %v1640_v60 }
  0xf6   : > { %v970_v63 = vpop.permute.xlu1 %969 }
  0xf7   : > { %v965_v1 = vpop.permute.xlu0 %964 }
  0xfa   : > { %v975_v0 = vpop.permute.xlu1 %974 }
  0xfb   : > { %1087 = vmatmul.mubr.bf16.gmra.mrb[4].mxu0 %v1642_v27  ;;  %1103 = vmatmul.mubr.bf16.gmra.mrb[4].mxu1 %v1643_v61  ;;  %v980_v6 = vpop.permute.xlu0 %979 }
  0xfe   : > { %v985_v2 = vpop.permute.xlu1 %984 }
  0xff   : > { %v990_v33 = vpop.permute.xlu0 %989 }
 0x102   : > { %v995_v31 = vpop.permute.xlu1 %994 }
 0x1c6   : > { %v1080_v7 = vpop.f32.mrb[0].mxu0  ;;  %v1096_v9 = vpop.f32.mrb[0].mxu1 }
 0x1c7   : > { %v1081_v11 = vadd.f32 %v1080_v7, %v960_v10  ;;  %v1097_v13 = vadd.f32 %v1096_v9, %v980_v6  ;;  %v1082_v14 = vpop.f32.mrb[1].mxu0  ;;  %v1098_v59 = vpop.f32.mrb[1].mxu1 }
 0x1c8   : > { %v1083_v15 = vpop.f32.mrb[2].mxu0  ;;  %v1099_v16 = vpop.f32.mrb[2].mxu1 }
 0x1c9   : > { %v1111_v17 = vmax.f32 %v1081_v11, 0.0  ;;  %v1115_v18 = vmax.f32 %v1097_v13, 0.0  ;;  %v1084_v20 = vadd.f32 %v1083_v15, %v965_v1  ;;  %v1100_v22 = vadd.f32 %v1099_v16, %v985_v2  ;;  %v1085_v8 = vpop.f32.mrb[3].mxu0  ;;  %v1101_v23 = vpop.f32.mrb[3].mxu1 }
 0x1cb   : > { %v2076_v24 = vpack.c.bf16 %v1111_v17, %v1111_v17  ;;  %v2078_v26 = vpack.c.bf16 %v1115_v18, %v1115_v18  ;;  %v1112_v28 = vmax.f32 %v1084_v20, 0.0  ;;  %v1116_v29 = vmax.f32 %v1100_v22, 0.0 }
 0x1cd   : > { %v1527_v34 = vpack.c.bf16 %v1112_v28, %v1112_v28  ;;  %v1531_v30 = vpack.c.bf16 %v1116_v29, %v1116_v29  ;;  %1160 = vrot.lane.b32.xlu0 %v2076_v24, %s1652_s18  ;;  %1152 = vst.msk [vmem:[%s2074_s22] sm:$0xf] %vm1151_vm7, %v2076_v24  ;;  %1156 = vst.msk [vmem:[%s2074_s22 + $0x10] sm:$0xf] %vm1151_vm7, %v2078_v26 }
 0x1ce   : > { %v1088_v35 = vpop.f32.mrb[4].mxu0  ;;  %v1104_v36 = vpop.f32.mrb[4].mxu1 }
 0x1cf   : > { %v1089_v37 = vadd.f32 %v1088_v35, %v970_v63  ;;  %v1105_v25 = vadd.f32 %v1104_v36, %v990_v33  ;;  %v1090_v12 = vpop.f32.mrb[5].mxu0  ;;  %v1106_v38 = vpop.f32.mrb[5].mxu1  ;;  %1162 = vrot.lane.b32.xlu1 %v1527_v34, %s1652_s18  ;;  %1153 = vst.msk [vmem:[%s2074_s22 + $0x4] sm:$0xf] %vm1151_vm7, %v1527_v34  ;;  %1157 = vst.msk [vmem:[%s2074_s22 + $0x14] sm:$0xf] %vm1151_vm7, %v1531_v30 }
 0x1d0   : > { %v1091_v5 = vpop.f32.mrb[6].mxu0  ;;  %v1107_v39 = vpop.f32.mrb[6].mxu1 }
 0x1d1   : > { %v1113_v40 = vmax.f32 %v1089_v37, 0.0  ;;  %v1117_v41 = vmax.f32 %v1105_v25, 0.0  ;;  %v1092_v42 = vadd.f32 %v1091_v5, %v975_v0  ;;  %v1108_v43 = vadd.f32 %v1107_v39, %v995_v31  ;;  %1168 = vrot.lane.b32.xlu0 %v2078_v26, %s1652_s18  ;;  %v1093_v44 = vpop.f32.mrb[7].mxu0  ;;  %v1109_v32 = vpop.f32.mrb[7].mxu1 }
 0x1d3   : > { %v2095_v46 = vpack.c.bf16 %v1113_v40, %v1113_v40  ;;  %v2097_v47 = vpack.c.bf16 %v1117_v41, %v1117_v41  ;;  %v1114_v21 = vmax.f32 %v1092_v42, 0.0  ;;  %v1118_v48 = vmax.f32 %v1108_v43, 0.0  ;;  %1170 = vrot.lane.b32.xlu1 %v1531_v30, %s1652_s18 }
 0x1d5   : > { %v1529_v45 = vpack.c.bf16 %v1114_v21, %v1114_v21  ;;  %v1533_v49 = vpack.c.bf16 %v1118_v48, %v1118_v48  ;;  %1193 = vrot.lane.b32.xlu0 %v2076_v24, %s1668_s13  ;;  %1154 = vst.msk [vmem:[%s2074_s22 + $0x8] sm:$0xf] %vm1151_vm7, %v2095_v46  ;;  %1158 = vst.msk [vmem:[%s2074_s22 + $0x18] sm:$0xf] %vm1151_vm7, %v2097_v47 }
 0x1d7   : > { %1195 = vrot.lane.b32.xlu1 %v1527_v34, %s1668_s13  ;;  %1155 = vst.msk [vmem:[%s2074_s22 + $0xc] sm:$0xf] %vm1151_vm7, %v1529_v45  ;;  %1159 = vst.msk [vmem:[%s2074_s22 + $0x1c] sm:$0xf] %vm1151_vm7, %v1533_v49 }
 0x1d9   : > { %1201 = vrot.lane.b32.xlu0 %v2078_v26, %s1668_s13 }
 0x1db   : > { %1203 = vrot.lane.b32.xlu1 %v1531_v30, %s1668_s13 }
 0x1dd   : > { %1226 = vrot.lane.b32.xlu0 %v2076_v24, %s1669_s24 }
 0x1df   : > { %1228 = vrot.lane.b32.xlu1 %v1527_v34, %s1669_s24 }
 0x1e1   : > { %1234 = vrot.lane.b32.xlu0 %v2078_v26, %s1669_s24 }
 0x1e3   : > { %1236 = vrot.lane.b32.xlu1 %v1531_v30, %s1669_s24 }
 0x1e5   : > { %1259 = vrot.lane.b32.xlu0 %v2076_v24, %s1657_s23 }
 0x1e7   : > { %1261 = vrot.lane.b32.xlu1 %v1527_v34, %s1657_s23 }
 0x1e9   : > { %1267 = vrot.lane.b32.xlu0 %v2078_v26, %s1657_s23 }
 0x1eb   : > { %1269 = vrot.lane.b32.xlu1 %v1531_v30, %s1657_s23 }
 0x1ed   : > { %1292 = vrot.lane.b32.xlu0 %v2076_v24, %s1670_s25 }
 0x1ef   : > { %1294 = vrot.lane.b32.xlu1 %v1527_v34, %s1670_s25 }
 0x1f1   : > { %1300 = vrot.lane.b32.xlu0 %v2078_v26, %s1670_s25 }
 0x1f3   : > { %1302 = vrot.lane.b32.xlu1 %v1531_v30, %s1670_s25 }
 0x1f5   : > { %1325 = vrot.lane.b32.xlu0 %v2076_v24, %s1671_s26 }
 0x1f7   : > { %1327 = vrot.lane.b32.xlu1 %v1527_v34, %s1671_s26 }
 0x1f9   : > { %1333 = vrot.lane.b32.xlu0 %v2078_v26, %s1671_s26 }
 0x1fb   : > { %1335 = vrot.lane.b32.xlu1 %v1531_v30, %s1671_s26 }
 0x1fd   : > { %1358 = vrot.lane.b32.xlu0 %v2076_v24, %s1672_s17 }
 0x1ff   : > { %1360 = vrot.lane.b32.xlu1 %v1527_v34, %s1672_s17 }
 0x201   : > { %1366 = vrot.lane.b32.xlu0 %v2078_v26, %s1672_s17 }
 0x203   : > { %1368 = vrot.lane.b32.xlu1 %v1531_v30, %s1672_s17 }
 0x205   : > { %1164 = vrot.lane.b32.xlu0 %v2095_v46, %s1652_s18 }
 0x207   : > { %1166 = vrot.lane.b32.xlu1 %v1529_v45, %s1652_s18 }
 0x209   : > { %1172 = vrot.lane.b32.xlu0 %v2097_v47, %s1652_s18 }
 0x20b   : > { %1174 = vrot.lane.b32.xlu1 %v1533_v49, %s1652_s18 }
 0x20d   : > { %1197 = vrot.lane.b32.xlu0 %v2095_v46, %s1668_s13 }
 0x20f   : > { %1199 = vrot.lane.b32.xlu1 %v1529_v45, %s1668_s13 }
 0x211   : > { %1205 = vrot.lane.b32.xlu0 %v2097_v47, %s1668_s13 }
 0x213   : > { %1207 = vrot.lane.b32.xlu1 %v1533_v49, %s1668_s13 }
 0x215   : > { %1230 = vrot.lane.b32.xlu0 %v2095_v46, %s1669_s24 }
 0x217   : > { %1232 = vrot.lane.b32.xlu1 %v1529_v45, %s1669_s24 }
 0x219   : > { %1238 = vrot.lane.b32.xlu0 %v2097_v47, %s1669_s24 }
 0x21b   : > { %1240 = vrot.lane.b32.xlu1 %v1533_v49, %s1669_s24 }
 0x21d   : > { %1263 = vrot.lane.b32.xlu0 %v2095_v46, %s1657_s23 }
 0x21f   : > { %1265 = vrot.lane.b32.xlu1 %v1529_v45, %s1657_s23 }
 0x221   : > { %1271 = vrot.lane.b32.xlu0 %v2097_v47, %s1657_s23 }
 0x223   : > { %1273 = vrot.lane.b32.xlu1 %v1533_v49, %s1657_s23 }
 0x225   : > { %1296 = vrot.lane.b32.xlu0 %v2095_v46, %s1670_s25 }
 0x227   : > { %1298 = vrot.lane.b32.xlu1 %v1529_v45, %s1670_s25 }
 0x229   : > { %1304 = vrot.lane.b32.xlu0 %v2097_v47, %s1670_s25 }
 0x22b   : > { %1306 = vrot.lane.b32.xlu1 %v1533_v49, %s1670_s25 }
 0x22d   : > { %1329 = vrot.lane.b32.xlu0 %v2095_v46, %s1671_s26 }
 0x22f   : > { %1331 = vrot.lane.b32.xlu1 %v1529_v45, %s1671_s26 }
 0x231   : > { %1337 = vrot.lane.b32.xlu0 %v2097_v47, %s1671_s26 }
 0x233   : > { %1339 = vrot.lane.b32.xlu1 %v1533_v49, %s1671_s26 }
 0x235   : > { %1362 = vrot.lane.b32.xlu0 %v2095_v46, %s1672_s17 }
 0x237   : > { %1364 = vrot.lane.b32.xlu1 %v1529_v45, %s1672_s17 }
 0x239   : > { %1370 = vrot.lane.b32.xlu0 %v2097_v47, %s1672_s17 }
 0x23b   : > { %1372 = vrot.lane.b32.xlu1 %v1533_v49, %s1672_s17 }
 0x23f   : > { %v1161_v19 = vpop.permute.xlu0 %1160 }
 0x240   : > { %1185 = vst.msk [vmem:[%s2074_s22] sm:$0xf] %vm1184_vm11, %v1161_v19 }
 0x241   : > { %v1163_v50 = vpop.permute.xlu1 %1162 }
 0x242   : > { %1186 = vst.msk [vmem:[%s2074_s22 + $0x4] sm:$0xf] %vm1184_vm11, %v1163_v50 }
 0x243   : > { %v1169_v51 = vpop.permute.xlu0 %1168 }
 0x244   : > { %1189 = vst.msk [vmem:[%s2074_s22 + $0x10] sm:$0xf] %vm1184_vm11, %v1169_v51 }
 0x245   : > { %v1171_v58 = vpop.permute.xlu1 %1170 }
 0x246   : > { %1190 = vst.msk [vmem:[%s2074_s22 + $0x14] sm:$0xf] %vm1184_vm11, %v1171_v58 }
 0x247   : > { %v1194_v52 = vpop.permute.xlu0 %1193 }
 0x248   : > { %1218 = vst.msk [vmem:[%s2074_s22] sm:$0xf] %vm1217_vm8, %v1194_v52 }
 0x249   : > { %v1196_v53 = vpop.permute.xlu1 %1195 }
 0x24a   : > { %1219 = vst.msk [vmem:[%s2074_s22 + $0x4] sm:$0xf] %vm1217_vm8, %v1196_v53 }
 0x24b   : > { %v1202_v54 = vpop.permute.xlu0 %1201 }
 0x24c   : > { %1222 = vst.msk [vmem:[%s2074_s22 + $0x10] sm:$0xf] %vm1217_vm8, %v1202_v54 }
 0x24d   : > { %v1204_v62 = vpop.permute.xlu1 %1203 }
 0x24e   : > { %1223 = vst.msk [vmem:[%s2074_s22 + $0x14] sm:$0xf] %vm1217_vm8, %v1204_v62 }
 0x24f   : > { %v1227_v3 = vpop.permute.xlu0 %1226 }
 0x250   : > { %1251 = vst.msk [vmem:[%s2074_s22] sm:$0xf] %vm1250_vm2, %v1227_v3 }
 0x251   : > { %v1229_v4 = vpop.permute.xlu1 %1228 }
 0x252   : > { %1252 = vst.msk [vmem:[%s2074_s22 + $0x4] sm:$0xf] %vm1250_vm2, %v1229_v4 }
 0x253   : > { %v1235_v55 = vpop.permute.xlu0 %1234 }
 0x254   : > { %1255 = vst.msk [vmem:[%s2074_s22 + $0x10] sm:$0xf] %vm1250_vm2, %v1235_v55 }
 0x255   : > { %v1237_v56 = vpop.permute.xlu1 %1236 }
 0x256   : > { %1256 = vst.msk [vmem:[%s2074_s22 + $0x14] sm:$0xf] %vm1250_vm2, %v1237_v56 }
 0x257   : > { %v1260_v57 = vpop.permute.xlu0 %1259 }
 0x258   : > { %1284 = vst.msk [vmem:[%s2074_s22] sm:$0xf] %vm1283_vm13, %v1260_v57 }
 0x259   : > { %v1262_v60 = vpop.permute.xlu1 %1261 }
 0x25a   : > { %1285 = vst.msk [vmem:[%s2074_s22 + $0x4] sm:$0xf] %vm1283_vm13, %v1262_v60 }
 0x25b   : > { %v1268_v27 = vpop.permute.xlu0 %1267 }
 0x25c   : > { %1288 = vst.msk [vmem:[%s2074_s22 + $0x10] sm:$0xf] %vm1283_vm13, %v1268_v27 }
 0x25d   : > { %v1270_v61 = vpop.permute.xlu1 %1269 }
 0x25e   : > { %1289 = vst.msk [vmem:[%s2074_s22 + $0x14] sm:$0xf] %vm1283_vm13, %v1270_v61 }
 0x25f   : > { %v1293_v10 = vpop.permute.xlu0 %1292 }
 0x260   : > { %1317 = vst.msk [vmem:[%s2074_s22] sm:$0xf] %vm1316_vm10, %v1293_v10 }
 0x261   : > { %v1295_v63 = vpop.permute.xlu1 %1294 }
 0x262   : > { %1318 = vst.msk [vmem:[%s2074_s22 + $0x4] sm:$0xf] %vm1316_vm10, %v1295_v63 }
 0x263   : > { %v1301_v0 = vpop.permute.xlu0 %1300 }
 0x264   : > { %1321 = vst.msk [vmem:[%s2074_s22 + $0x10] sm:$0xf] %vm1316_vm10, %v1301_v0 }
 0x265   : > { %v1303_v1 = vpop.permute.xlu1 %1302 }
 0x266   : > { %1322 = vst.msk [vmem:[%s2074_s22 + $0x14] sm:$0xf] %vm1316_vm10, %v1303_v1 }
 0x267   : > { %v1326_v2 = vpop.permute.xlu0 %1325 }
 0x268   : > { %1350 = vst.msk [vmem:[%s2074_s22] sm:$0xf] %vm1349_vm15, %v1326_v2 }
 0x269   : > { %v1328_v6 = vpop.permute.xlu1 %1327 }
 0x26a   : > { %1351 = vst.msk [vmem:[%s2074_s22 + $0x4] sm:$0xf] %vm1349_vm15, %v1328_v6 }
 0x26b   : > { %v1334_v7 = vpop.permute.xlu0 %1333 }
 0x26c   : > { %1354 = vst.msk [vmem:[%s2074_s22 + $0x10] sm:$0xf] %vm1349_vm15, %v1334_v7 }
 0x26d   : > { %v1336_v9 = vpop.permute.xlu1 %1335 }
 0x26e   : > { %1355 = vst.msk [vmem:[%s2074_s22 + $0x14] sm:$0xf] %vm1349_vm15, %v1336_v9 }
 0x26f   : > { %v1359_v11 = vpop.permute.xlu0 %1358 }
 0x270   : > { %1383 = vst.msk [vmem:[%s2074_s22] sm:$0xf] %vm1382_vm6, %v1359_v11 }
 0x271   : > { %v1361_v13 = vpop.permute.xlu1 %1360 }
 0x272   : > { %1384 = vst.msk [vmem:[%s2074_s22 + $0x4] sm:$0xf] %vm1382_vm6, %v1361_v13 }
 0x273   : > { %v1367_v14 = vpop.permute.xlu0 %1366 }
 0x274   : > { %1387 = vst.msk [vmem:[%s2074_s22 + $0x10] sm:$0xf] %vm1382_vm6, %v1367_v14 }
 0x275   : > { %v1369_v59 = vpop.permute.xlu1 %1368 }
 0x276   : > { %1388 = vst.msk [vmem:[%s2074_s22 + $0x14] sm:$0xf] %vm1382_vm6, %v1369_v59 }
 0x277   : > { %v1165_v15 = vpop.permute.xlu0 %1164 }
 0x278   : > { %1187 = vst.msk [vmem:[%s2074_s22 + $0x8] sm:$0xf] %vm1184_vm11, %v1165_v15 }
 0x279   : > { %v1167_v16 = vpop.permute.xlu1 %1166 }
 0x27a   : > { %1188 = vst.msk [vmem:[%s2074_s22 + $0xc] sm:$0xf] %vm1184_vm11, %v1167_v16 }
 0x27b   : > { %v1173_v17 = vpop.permute.xlu0 %1172 }
 0x27c   : > { %1191 = vst.msk [vmem:[%s2074_s22 + $0x18] sm:$0xf] %vm1184_vm11, %v1173_v17 }
 0x27d   : > { %v1175_v18 = vpop.permute.xlu1 %1174 }
 0x27e   : > { %1192 = vst.msk [vmem:[%s2074_s22 + $0x1c] sm:$0xf] %vm1184_vm11, %v1175_v18 }
 0x27f   : > { %v1198_v20 = vpop.permute.xlu0 %1197 }
 0x280   : > { %1220 = vst.msk [vmem:[%s2074_s22 + $0x8] sm:$0xf] %vm1217_vm8, %v1198_v20 }
 0x281   : > { %v1200_v22 = vpop.permute.xlu1 %1199 }
 0x282   : > { %1221 = vst.msk [vmem:[%s2074_s22 + $0xc] sm:$0xf] %vm1217_vm8, %v1200_v22 }
 0x283   : > { %v1206_v8 = vpop.permute.xlu0 %1205 }
 0x284   : > { %1224 = vst.msk [vmem:[%s2074_s22 + $0x18] sm:$0xf] %vm1217_vm8, %v1206_v8 }
 0x285   : > { %v1208_v23 = vpop.permute.xlu1 %1207 }
 0x286   : > { %1225 = vst.msk [vmem:[%s2074_s22 + $0x1c] sm:$0xf] %vm1217_vm8, %v1208_v23 }
 0x287   : > { %v1231_v24 = vpop.permute.xlu0 %1230 }
 0x288   : > { %1253 = vst.msk [vmem:[%s2074_s22 + $0x8] sm:$0xf] %vm1250_vm2, %v1231_v24 }
 0x289   : > { %v1233_v26 = vpop.permute.xlu1 %1232 }
 0x28a   : > { %1254 = vst.msk [vmem:[%s2074_s22 + $0xc] sm:$0xf] %vm1250_vm2, %v1233_v26 }
 0x28b   : > { %v1239_v28 = vpop.permute.xlu0 %1238 }
 0x28c   : > { %1257 = vst.msk [vmem:[%s2074_s22 + $0x18] sm:$0xf] %vm1250_vm2, %v1239_v28 }
 0x28d   : > { %v1241_v29 = vpop.permute.xlu1 %1240 }
 0x28e   : > { %1258 = vst.msk [vmem:[%s2074_s22 + $0x1c] sm:$0xf] %vm1250_vm2, %v1241_v29 }
 0x28f   : > { %v1264_v31 = vpop.permute.xlu0 %1263 }
 0x290   : > { %1286 = vst.msk [vmem:[%s2074_s22 + $0x8] sm:$0xf] %vm1283_vm13, %v1264_v31 }
 0x291   : > { %v1266_v33 = vpop.permute.xlu1 %1265 }
 0x292   : > { %1287 = vst.msk [vmem:[%s2074_s22 + $0xc] sm:$0xf] %vm1283_vm13, %v1266_v33 }
 0x293   : > { %v1272_v34 = vpop.permute.xlu0 %1271 }
 0x294   : > { %1290 = vst.msk [vmem:[%s2074_s22 + $0x18] sm:$0xf] %vm1283_vm13, %v1272_v34 }
 0x295   : > { %v1274_v30 = vpop.permute.xlu1 %1273 }
 0x296   : > { %1291 = vst.msk [vmem:[%s2074_s22 + $0x1c] sm:$0xf] %vm1283_vm13, %v1274_v30 }
 0x297   : > { %v1297_v35 = vpop.permute.xlu0 %1296 }
 0x298   : > { %1319 = vst.msk [vmem:[%s2074_s22 + $0x8] sm:$0xf] %vm1316_vm10, %v1297_v35 }
 0x299   : > { %v1299_v36 = vpop.permute.xlu1 %1298 }
 0x29a   : > { %1320 = vst.msk [vmem:[%s2074_s22 + $0xc] sm:$0xf] %vm1316_vm10, %v1299_v36 }
 0x29b   : > { %v1305_v37 = vpop.permute.xlu0 %1304 }
 0x29c   : > { %1323 = vst.msk [vmem:[%s2074_s22 + $0x18] sm:$0xf] %vm1316_vm10, %v1305_v37 }
 0x29d   : > { %v1307_v25 = vpop.permute.xlu1 %1306 }
 0x29e   : > { %1324 = vst.msk [vmem:[%s2074_s22 + $0x1c] sm:$0xf] %vm1316_vm10, %v1307_v25 }
 0x29f   : > { %v1330_v12 = vpop.permute.xlu0 %1329 }
 0x2a0   : > { %1352 = vst.msk [vmem:[%s2074_s22 + $0x8] sm:$0xf] %vm1349_vm15, %v1330_v12 }
 0x2a1   : > { %v1332_v38 = vpop.permute.xlu1 %1331 }
 0x2a2   : > { %1353 = vst.msk [vmem:[%s2074_s22 + $0xc] sm:$0xf] %vm1349_vm15, %v1332_v38 }
 0x2a3   : > { %v1338_v5 = vpop.permute.xlu0 %1337 }
 0x2a4   : > { %1356 = vst.msk [vmem:[%s2074_s22 + $0x18] sm:$0xf] %vm1349_vm15, %v1338_v5 }
 0x2a5   : > { %v1340_v39 = vpop.permute.xlu1 %1339 }
 0x2a6   : > { %1357 = vst.msk [vmem:[%s2074_s22 + $0x1c] sm:$0xf] %vm1349_vm15, %v1340_v39 }
 0x2a7   : > { %v1363_v40 = vpop.permute.xlu0 %1362 }
 0x2a8   : > { %1385 = vst.msk [vmem:[%s2074_s22 + $0x8] sm:$0xf] %vm1382_vm6, %v1363_v40 }
 0x2a9   : > { %v1365_v41 = vpop.permute.xlu1 %1364 }
 0x2aa   : > { %1386 = vst.msk [vmem:[%s2074_s22 + $0xc] sm:$0xf] %vm1382_vm6, %v1365_v41 }
 0x2ab   : > { %v1371_v42 = vpop.permute.xlu0 %1370 }
 0x2ac   : > { %1389 = vst.msk [vmem:[%s2074_s22 + $0x18] sm:$0xf] %vm1382_vm6, %v1371_v42 }
 0x2ad   : > { %v1373_v43 = vpop.permute.xlu1 %1372 }
 0x2ae   : > { %1390 = vst.msk [vmem:[%s2074_s22 + $0x1c] sm:$0xf] %vm1382_vm6, %v1373_v43 }
 0x2af PF: > { %s13_s12 = sadd.s32 1, %s1650_s12  }
 0x2b0   : > { %p10_p4 = scmp.ge.s32.totalorder %s13_s12, 4  }
 0x2b2   :  { %12 = sbr.rel (!%p10_p4) target bundleno = 1 (0x1), region = 62 }

</bundles_post_ra>
